<compile_context>
chip_gen: v6e
topology: v6e:2x2x1
jax: 0.10.0
libtpu: 0.0.40
codegen_flags: <defaults>
</compile_context>

<pallas_src>
from functools import partial

import jax
import jax.numpy as jnp
from jax.experimental import pallas as pl
from jax.experimental.pallas import tpu as pltpu

EPS = 1e-5  # nn.InstanceNorm2d default eps


def _residual_block_kernel(x_ref, w1_ref, w2_ref, np_ref, m1_ref, m2_ref,
                           o_ref, *, H, W, W_pad, conv_dtype):
    """One sample per grid step.

    x_ref : (C, H*W_pad + 4) f32    lane-dense input, rows on a W_pad stride
    w?_ref: (3, C, 3C) conv_dtype   kh-indexed weights, kw folded into Cin
    np_ref: (C, 4) f32              columns = [gamma1, beta1, gamma2, beta2]
    m?_ref: (1, L1) / (1, L2) f32   precomputed validity masks
    o_ref : (C, (H-4)*W_pad)        output on the same W_pad stride
    """
    C = o_ref.shape[0]
    L1 = (H - 2) * W_pad + 2      # conv1 slab (+2 slack for conv2's last taps)
    L2 = (H - 4) * W_pad          # conv2 / output slab length
    M1 = L1 + 2 * W_pad           # stacked conv1 input slab length
    M2 = L2 + 2 * W_pad           # stacked conv2 input slab length
    inv_n1 = 1.0 / ((H - 2) * (W - 2))
    inv_n2 = 1.0 / ((H - 4) * (W - 4))

    g1 = np_ref[:, 0:1]
    be1 = np_ref[:, 1:2]
    g2 = np_ref[:, 2:3]
    be2 = np_ref[:, 3:4]

    # ---- conv1: kw folded into K = 3C, one MXU matmul per kh ---------------
    # kh offsets (kh * W_pad) are multiples of 128 -> lane-aligned, free.
    x_cv = x_ref[...].astype(conv_dtype)                        # (C, XLEN)
    x_stk = jnp.concatenate(
        [x_cv[:, 0:M1], x_cv[:, 1:1 + M1], x_cv[:, 2:2 + M1]], axis=0)
    acc1 = jnp.dot(w1_ref[0], x_stk[:, 0:L1],
                   preferred_element_type=jnp.float32)
    acc1 += jnp.dot(w1_ref[1], x_stk[:, W_pad:W_pad + L1],
                    preferred_element_type=jnp.float32)
    acc1 += jnp.dot(w1_ref[2], x_stk[:, 2 * W_pad:2 * W_pad + L1],
                    preferred_element_type=jnp.float32)
    acc1 = acc1 * m1_ref[...]        # zero wrap/pad columns (static mask DMA)

    # ---- InstanceNorm 1 (single traversal, folded affine) + ReLU -----------
    s1 = jnp.sum(acc1, axis=1, keepdims=True)
    s2 = jnp.sum(acc1 * acc1, axis=1, keepdims=True)
    mean1 = s1 * inv_n1
    var1 = jnp.maximum(s2 * inv_n1 - mean1 * mean1, 0.0)
    scale1 = g1 * jax.lax.rsqrt(var1 + EPS)
    shift1 = be1 - mean1 * scale1
    y1 = jnp.maximum(acc1 * scale1 + shift1, 0.0).astype(conv_dtype)
    # Junk columns of y1 are finite and only ever feed junk (masked) columns
    # of conv2's output, so no fix-up is needed before the second conv.

    # ---- conv2 ---------------------------------------------------------------
    y_stk = jnp.concatenate(
        [y1[:, 0:M2], y1[:, 1:1 + M2], y1[:, 2:2 + M2]], axis=0)
    acc2 = jnp.dot(w2_ref[0], y_stk[:, 0:L2],
                   preferred_element_type=jnp.float32)
    acc2 += jnp.dot(w2_ref[1], y_stk[:, W_pad:W_pad + L2],
                    preferred_element_type=jnp.float32)
    acc2 += jnp.dot(w2_ref[2], y_stk[:, 2 * W_pad:2 * W_pad + L2],
                    preferred_element_type=jnp.float32)
    acc2 = acc2 * m2_ref[...]

    # ---- InstanceNorm 2 + residual -------------------------------------------
    t1 = jnp.sum(acc2, axis=1, keepdims=True)
    t2 = jnp.sum(acc2 * acc2, axis=1, keepdims=True)
    mean2 = t1 * inv_n2
    var2 = jnp.maximum(t2 * inv_n2 - mean2 * mean2, 0.0)
    scale2 = g2 * jax.lax.rsqrt(var2 + EPS)
    shift2 = be2 - mean2 * scale2

    # residual = x[:, 2:-2, 2:-2] in the same W_pad-stride layout: read late,
    # straight from the ref (keeps the f32 slab out of the peak live set).
    residual = x_ref[:, 2 * W_pad + 2: 2 * W_pad + 2 + L2]
    o_ref[...] = (acc2 * scale2 + shift2 + residual).astype(o_ref.dtype)


def residual_block(x, params, *, conv_dtype=jnp.bfloat16):
    """x: (B, C, H, W) f32.  Returns (B, C, H-4, W-4), matching PyTorch."""
    B, C, H, W = x.shape
    Ho, Wo = H - 4, W - 4
    W_pad = ((W + 127) // 128) * 128          # 128-aligned row stride
    XLEN = H * W_pad + 4                      # +4 zero tail so kw shifts stay in bounds
    L1 = (H - 2) * W_pad + 2
    L2 = (H - 4) * W_pad

    # Lane-dense flattened input slab with the padded row stride.
    x_f32 = x.astype(jnp.float32)
    x_rows = jnp.pad(x_f32, ((0, 0), (0, 0), (0, 0), (0, W_pad - W)))
    x_flat = jnp.pad(x_rows.reshape(B, C, H * W_pad),
                     ((0, 0), (0, 0), (0, XLEN - H * W_pad)))

    # kh-indexed weights with the kw taps folded into the contraction axis.
    # Block j of the Cin axis pairs with the activation slab shifted by kw=j.
    def fold_kw(w):
        return jnp.stack(
            [jnp.concatenate([w[:, :, kh, kw] for kw in range(3)], axis=1)
             for kh in range(3)], axis=0).astype(conv_dtype)    # (3, C, 3C)

    w1_t = fold_kw(params["w1"])
    w2_t = fold_kw(params["w2"])

    # Conv biases (b1, b2) are exactly cancelled by the InstanceNorm mean
    # subtraction -> not passed to the kernel at all.
    norm_p = jnp.stack(
        [params["g1"], params["be1"], params["g2"], params["be2"]],
        axis=1).astype(jnp.float32)                             # (C, 4)

    # Precomputed validity masks (static given H, W) -> no per-step iota/mod.
    idx1 = jnp.arange(L1)
    mask1 = ((idx1 % W_pad < W - 2) & (idx1 // W_pad < H - 2)
             ).astype(jnp.float32)[None, :]
    idx2 = jnp.arange(L2)
    mask2 = (idx2 % W_pad < W - 4).astype(jnp.float32)[None, :]

    kernel = partial(_residual_block_kernel, H=H, W=W, W_pad=W_pad,
                     conv_dtype=conv_dtype)

    # --- generation-aware VMEM budget ----------------------------------------
    f32b = 4
    wb = jnp.dtype(conv_dtype).itemsize
    M1 = L1 + 2 * W_pad
    M2 = L2 + 2 * W_pad
    est = (2 * C * XLEN * f32b                 # input block (double buffered)
           + 2 * 2 * 3 * C * 3 * C * wb        # both weight operands (db)
           + 2 * (L1 + L2 + 4 * C) * f32b      # masks + norm params (db)
           + 2 * C * L2 * f32b                 # output block (db)
           + C * XLEN * wb + 3 * C * M1 * wb   # x_cv + stacked conv1 slab
           + 2 * C * L1 * f32b + C * L1 * wb   # acc1 / stats pass + y1
           + 3 * C * M2 * wb                   # stacked conv2 slab
           + 3 * C * L2 * f32b)                # acc2 + epilogue temporaries
    try:
        info = pltpu.get_tpu_info()
        vmem_cap = int(getattr(info, "vmem_capacity_bytes", 0)) or (64 << 20)
    except Exception:                          # non-TPU backend / older runtime
        vmem_cap = 64 << 20
    vmem_limit = int(min(max(2 * est, 16 << 20), int(vmem_cap * 0.85)))

    out_full = pl.pallas_call(
        kernel,
        out_shape=jax.ShapeDtypeStruct((B, C, L2), x.dtype),
        grid=(B,),
        in_specs=[
            pl.BlockSpec((None, C, XLEN), lambda b: (b, 0, 0)),   # x slab
            pl.BlockSpec((3, C, 3 * C), lambda b: (0, 0, 0)),     # conv1 W
            pl.BlockSpec((3, C, 3 * C), lambda b: (0, 0, 0)),     # conv2 W
            pl.BlockSpec((C, 4), lambda b: (0, 0)),               # gamma/beta
            pl.BlockSpec((1, L1), lambda b: (0, 0)),              # mask1
            pl.BlockSpec((1, L2), lambda b: (0, 0)),              # mask2
        ],
        out_specs=pl.BlockSpec((None, C, L2), lambda b: (b, 0, 0)),
        compiler_params=pltpu.CompilerParams(
            dimension_semantics=("parallel",),
            vmem_limit_bytes=vmem_limit),
    )(x_flat, w1_t, w2_t, norm_p, mask1, mask2)

    # Drop the padded wrap columns (layout plumbing, done outside the kernel).
    return out_full.reshape(B, C, Ho, W_pad)[:, :, :, :Wo]


def reference_forward(x, p):
    """Pure-JAX reference mirroring the PyTorch module semantics."""
    def conv(x, w, b):
        y = jax.lax.conv_general_dilated(
            x, w, window_strides=(1, 1), padding="VALID",
            dimension_numbers=("NCHW", "OIHW", "NCHW"))
        return y + b[None, :, None, None]

    def inorm(y, g, be):
        m = y.mean(axis=(2, 3), keepdims=True)
        v = ((y - m) ** 2).mean(axis=(2, 3), keepdims=True)
        return (y - m) / jnp.sqrt(v + EPS) * g[None, :, None, None] \
            + be[None, :, None, None]

    out = jax.nn.relu(inorm(conv(x, p["w1"], p["b1"]), p["g1"], p["be1"]))
    out = inorm(conv(out, p["w2"], p["b2"]), p["g2"], p["be2"])
    return out + x[:, :, 2:-2, 2:-2]


if __name__ == "__main__":
    B, C, H, W = 2, 4, 16, 16
    key = jax.random.PRNGKey(0)
    kx, kw1, kb1, kw2, kb2 = jax.random.split(key, 5)

    x = jax.random.normal(kx, (B, C, H, W), dtype=jnp.float32)

    # Shapes match nn.Conv2d(C, C, 3) / nn.InstanceNorm2d(C, affine=True).
    params = {
        "w1": jax.random.normal(kw1, (C, C, 3, 3), jnp.float32) * 0.1,
        "b1": jax.random.normal(kb1, (C,), jnp.float32) * 0.1,
        "w2": jax.random.normal(kw2, (C, C, 3, 3), jnp.float32) * 0.1,
        "b2": jax.random.normal(kb2, (C,), jnp.float32) * 0.1,
        "g1": jnp.ones((C,), jnp.float32),
        "be1": jnp.zeros((C,), jnp.float32),
        "g2": jnp.ones((C,), jnp.float32),
        "be2": jnp.zeros((C,), jnp.float32),
    }

    ref = reference_forward(x, params)

    # f32 MXU-operand path: tight tolerance vs reference.
    out_f32 = jax.block_until_ready(
        residual_block(x, params, conv_dtype=jnp.float32))
    assert out_f32.shape == (B, C, H - 4, W - 4)
    assert jnp.allclose(out_f32, ref, atol=1e-4, rtol=1e-4), \
        "f32 kernel mismatch vs reference"

    # bf16 MXU-operand path (default; f32 accumulation + f32 norm math).
    out_bf16 = jax.block_until_ready(
        residual_block(x, params, conv_dtype=jnp.bfloat16))
    assert out_bf16.shape == (B, C, H - 4, W - 4)
    assert jnp.allclose(out_bf16, ref, atol=5e-2, rtol=5e-2), \
        "bf16 kernel mismatch vs reference"

    print("KERNEL_OK")
</pallas_src>

<mosaic_0001>
module attributes {stable_mosaic.version = 11 : i64} {
  func.func @_residual_block_kernel(%arg0: i32, %arg1: memref<1x4x2052xf32, #tpu.memory_space<vmem>>, %arg2: memref<3x4x12xf32, #tpu.memory_space<vmem>>, %arg3: memref<3x4x12xf32, #tpu.memory_space<vmem>>, %arg4: memref<4x4xf32, #tpu.memory_space<vmem>>, %arg5: memref<1x1794xf32, #tpu.memory_space<vmem>>, %arg6: memref<1x1536xf32, #tpu.memory_space<vmem>>, %arg7: memref<1x4x1536xf32, #tpu.memory_space<vmem>>) attributes {dimension_semantics = [#tpu.dimension_semantics<parallel>], iteration_bounds = array<i64: 2>, scalar_prefetch = 0 : i64, scratch_operands = 0 : i64, tpu.core_type = #tpu.core_type<tc>, window_params = [{transform_indices = @transform_0, window_bounds = array<i64: 1, 4, 2052>}, {pipeline_mode = #tpu.pipeline_mode<synchronous>, transform_indices = @transform_1, window_bounds = array<i64: 3, 4, 12>}, {pipeline_mode = #tpu.pipeline_mode<synchronous>, transform_indices = @transform_2, window_bounds = array<i64: 3, 4, 12>}, {pipeline_mode = #tpu.pipeline_mode<synchronous>, transform_indices = @transform_3, window_bounds = array<i64: 4, 4>}, {pipeline_mode = #tpu.pipeline_mode<synchronous>, transform_indices = @transform_4, window_bounds = array<i64: 1, 1794>}, {pipeline_mode = #tpu.pipeline_mode<synchronous>, transform_indices = @transform_5, window_bounds = array<i64: 1, 1536>}, {transform_indices = @transform_6, window_bounds = array<i64: 1, 4, 1536>}]} {
    %c0 = arith.constant 0 : index
    %c0_0 = arith.constant 0 : index
    %0 = vector.load %arg4[%c0, %c0_0] : memref<4x4xf32, #tpu.memory_space<vmem>>, vector<4x1xf32>
    %c0_1 = arith.constant 0 : index
    %c1 = arith.constant 1 : index
    %1 = vector.load %arg4[%c0_1, %c1] : memref<4x4xf32, #tpu.memory_space<vmem>>, vector<4x1xf32>
    %c0_2 = arith.constant 0 : index
    %c2 = arith.constant 2 : index
    %2 = vector.load %arg4[%c0_2, %c2] : memref<4x4xf32, #tpu.memory_space<vmem>>, vector<4x1xf32>
    %c0_3 = arith.constant 0 : index
    %c3 = arith.constant 3 : index
    %3 = vector.load %arg4[%c0_3, %c3] : memref<4x4xf32, #tpu.memory_space<vmem>>, vector<4x1xf32>
    %c0_4 = arith.constant 0 : index
    %c0_5 = arith.constant 0 : index
    %c0_6 = arith.constant 0 : index
    %4 = vector.load %arg1[%c0_4, %c0_5, %c0_6] : memref<1x4x2052xf32, #tpu.memory_space<vmem>>, vector<1x4x2052xf32>
    %5 = vector.shape_cast %4 : vector<1x4x2052xf32> to vector<4x2052xf32>
    %6 = vector.extract_strided_slice %5 {offsets = [0, 0], sizes = [4, 2050], strides = [1, 1]} : vector<4x2052xf32> to vector<4x2050xf32>
    %7 = vector.extract_strided_slice %5 {offsets = [0, 1], sizes = [4, 2050], strides = [1, 1]} : vector<4x2052xf32> to vector<4x2050xf32>
    %8 = vector.extract_strided_slice %5 {offsets = [0, 2], sizes = [4, 2050], strides = [1, 1]} : vector<4x2052xf32> to vector<4x2050xf32>
    %9 = tpu.concatenate %6, %7, %8 in 0 : vector<4x2050xf32>, vector<4x2050xf32>, vector<4x2050xf32> -> vector<12x2050xf32>
    %c0_7 = arith.constant 0 : index
    %c0_8 = arith.constant 0 : index
    %c0_9 = arith.constant 0 : index
    %10 = vector.load %arg2[%c0_7, %c0_8, %c0_9] : memref<3x4x12xf32, #tpu.memory_space<vmem>>, vector<1x4x12xf32>
    %11 = vector.shape_cast %10 : vector<1x4x12xf32> to vector<4x12xf32>
    %12 = vector.extract_strided_slice %9 {offsets = [0, 0], sizes = [12, 1794], strides = [1, 1]} : vector<12x2050xf32> to vector<12x1794xf32>
    %cst = arith.constant dense<0.000000e+00> : vector<4x1794xf32>
    %13 = tpu.matmul %11, %12, %cst {dimension_numbers = #tpu.dot_dimension_numbers<[1], [0], [0], [1], [0, 0, 1, 1], [], []>} : vector<4x12xf32>, vector<12x1794xf32>, vector<4x1794xf32> -> vector<4x1794xf32>
    %c1_10 = arith.constant 1 : index
    %c0_11 = arith.constant 0 : index
    %c0_12 = arith.constant 0 : index
    %14 = vector.load %arg2[%c1_10, %c0_11, %c0_12] : memref<3x4x12xf32, #tpu.memory_space<vmem>>, vector<1x4x12xf32>
    %15 = vector.shape_cast %14 : vector<1x4x12xf32> to vector<4x12xf32>
    %16 = vector.extract_strided_slice %9 {offsets = [0, 128], sizes = [12, 1794], strides = [1, 1]} : vector<12x2050xf32> to vector<12x1794xf32>
    %cst_13 = arith.constant dense<0.000000e+00> : vector<4x1794xf32>
    %17 = tpu.matmul %15, %16, %cst_13 {dimension_numbers = #tpu.dot_dimension_numbers<[1], [0], [0], [1], [0, 0, 1, 1], [], []>} : vector<4x12xf32>, vector<12x1794xf32>, vector<4x1794xf32> -> vector<4x1794xf32>
    %18 = arith.addf %13, %17 : vector<4x1794xf32>
    %c2_14 = arith.constant 2 : index
    %c0_15 = arith.constant 0 : index
    %c0_16 = arith.constant 0 : index
    %19 = vector.load %arg2[%c2_14, %c0_15, %c0_16] : memref<3x4x12xf32, #tpu.memory_space<vmem>>, vector<1x4x12xf32>
    %20 = vector.shape_cast %19 : vector<1x4x12xf32> to vector<4x12xf32>
    %21 = vector.extract_strided_slice %9 {offsets = [0, 256], sizes = [12, 1794], strides = [1, 1]} : vector<12x2050xf32> to vector<12x1794xf32>
    %cst_17 = arith.constant dense<0.000000e+00> : vector<4x1794xf32>
    %22 = tpu.matmul %20, %21, %cst_17 {dimension_numbers = #tpu.dot_dimension_numbers<[1], [0], [0], [1], [0, 0, 1, 1], [], []>} : vector<4x12xf32>, vector<12x1794xf32>, vector<4x1794xf32> -> vector<4x1794xf32>
    %23 = arith.addf %18, %22 : vector<4x1794xf32>
    %c0_18 = arith.constant 0 : index
    %c0_19 = arith.constant 0 : index
    %24 = vector.load %arg5[%c0_18, %c0_19] : memref<1x1794xf32, #tpu.memory_space<vmem>>, vector<1x1794xf32>
    %25 = vector.broadcast %24 : vector<1x1794xf32> to vector<4x1794xf32>
    %26 = arith.mulf %23, %25 : vector<4x1794xf32>
    %cst_20 = arith.constant dense<0.000000e+00> : vector<4xf32>
    %27 = vector.multi_reduction <add>, %26, %cst_20 [1] : vector<4x1794xf32> to vector<4xf32>
    %28 = vector.shape_cast %27 : vector<4xf32> to vector<4x1xf32>
    %29 = arith.mulf %26, %26 : vector<4x1794xf32>
    %cst_21 = arith.constant dense<0.000000e+00> : vector<4xf32>
    %30 = vector.multi_reduction <add>, %29, %cst_21 [1] : vector<4x1794xf32> to vector<4xf32>
    %31 = vector.shape_cast %30 : vector<4xf32> to vector<4x1xf32>
    %cst_22 = arith.constant 0.00510204071 : f32
    %32 = vector.broadcast %cst_22 : f32 to vector<4x1xf32>
    %33 = arith.mulf %28, %32 : vector<4x1xf32>
    %cst_23 = arith.constant 0.00510204071 : f32
    %34 = vector.broadcast %cst_23 : f32 to vector<4x1xf32>
    %35 = arith.mulf %31, %34 : vector<4x1xf32>
    %36 = arith.mulf %33, %33 : vector<4x1xf32>
    %37 = arith.subf %35, %36 : vector<4x1xf32>
    %cst_24 = arith.constant 0.000000e+00 : f32
    %38 = vector.broadcast %cst_24 : f32 to vector<4x1xf32>
    %39 = arith.maximumf %37, %38 : vector<4x1xf32>
    %cst_25 = arith.constant 9.99999974E-6 : f32
    %40 = vector.broadcast %cst_25 : f32 to vector<4x1xf32>
    %41 = arith.addf %39, %40 : vector<4x1xf32>
    %42 = math.rsqrt %41 : vector<4x1xf32>
    %43 = arith.mulf %0, %42 : vector<4x1xf32>
    %44 = arith.mulf %33, %43 : vector<4x1xf32>
    %45 = arith.subf %1, %44 : vector<4x1xf32>
    %46 = vector.broadcast %43 : vector<4x1xf32> to vector<4x1794xf32>
    %47 = arith.mulf %26, %46 : vector<4x1794xf32>
    %48 = vector.broadcast %45 : vector<4x1xf32> to vector<4x1794xf32>
    %49 = arith.addf %47, %48 : vector<4x1794xf32>
    %cst_26 = arith.constant 0.000000e+00 : f32
    %50 = vector.broadcast %cst_26 : f32 to vector<4x1794xf32>
    %51 = arith.maximumf %49, %50 : vector<4x1794xf32>
    %52 = vector.extract_strided_slice %51 {offsets = [0, 0], sizes = [4, 1792], strides = [1, 1]} : vector<4x1794xf32> to vector<4x1792xf32>
    %53 = vector.extract_strided_slice %51 {offsets = [0, 1], sizes = [4, 1792], strides = [1, 1]} : vector<4x1794xf32> to vector<4x1792xf32>
    %54 = vector.extract_strided_slice %51 {offsets = [0, 2], sizes = [4, 1792], strides = [1, 1]} : vector<4x1794xf32> to vector<4x1792xf32>
    %55 = tpu.concatenate %52, %53, %54 in 0 : vector<4x1792xf32>, vector<4x1792xf32>, vector<4x1792xf32> -> vector<12x1792xf32>
    %c0_27 = arith.constant 0 : index
    %c0_28 = arith.constant 0 : index
    %c0_29 = arith.constant 0 : index
    %56 = vector.load %arg3[%c0_27, %c0_28, %c0_29] : memref<3x4x12xf32, #tpu.memory_space<vmem>>, vector<1x4x12xf32>
    %57 = vector.shape_cast %56 : vector<1x4x12xf32> to vector<4x12xf32>
    %58 = vector.extract_strided_slice %55 {offsets = [0, 0], sizes = [12, 1536], strides = [1, 1]} : vector<12x1792xf32> to vector<12x1536xf32>
    %cst_30 = arith.constant dense<0.000000e+00> : vector<4x1536xf32>
    %59 = tpu.matmul %57, %58, %cst_30 {dimension_numbers = #tpu.dot_dimension_numbers<[1], [0], [0], [1], [0, 0, 1, 1], [], []>} : vector<4x12xf32>, vector<12x1536xf32>, vector<4x1536xf32> -> vector<4x1536xf32>
    %c1_31 = arith.constant 1 : index
    %c0_32 = arith.constant 0 : index
    %c0_33 = arith.constant 0 : index
    %60 = vector.load %arg3[%c1_31, %c0_32, %c0_33] : memref<3x4x12xf32, #tpu.memory_space<vmem>>, vector<1x4x12xf32>
    %61 = vector.shape_cast %60 : vector<1x4x12xf32> to vector<4x12xf32>
    %62 = vector.extract_strided_slice %55 {offsets = [0, 128], sizes = [12, 1536], strides = [1, 1]} : vector<12x1792xf32> to vector<12x1536xf32>
    %cst_34 = arith.constant dense<0.000000e+00> : vector<4x1536xf32>
    %63 = tpu.matmul %61, %62, %cst_34 {dimension_numbers = #tpu.dot_dimension_numbers<[1], [0], [0], [1], [0, 0, 1, 1], [], []>} : vector<4x12xf32>, vector<12x1536xf32>, vector<4x1536xf32> -> vector<4x1536xf32>
    %64 = arith.addf %59, %63 : vector<4x1536xf32>
    %c2_35 = arith.constant 2 : index
    %c0_36 = arith.constant 0 : index
    %c0_37 = arith.constant 0 : index
    %65 = vector.load %arg3[%c2_35, %c0_36, %c0_37] : memref<3x4x12xf32, #tpu.memory_space<vmem>>, vector<1x4x12xf32>
    %66 = vector.shape_cast %65 : vector<1x4x12xf32> to vector<4x12xf32>
    %67 = vector.extract_strided_slice %55 {offsets = [0, 256], sizes = [12, 1536], strides = [1, 1]} : vector<12x1792xf32> to vector<12x1536xf32>
    %cst_38 = arith.constant dense<0.000000e+00> : vector<4x1536xf32>
    %68 = tpu.matmul %66, %67, %cst_38 {dimension_numbers = #tpu.dot_dimension_numbers<[1], [0], [0], [1], [0, 0, 1, 1], [], []>} : vector<4x12xf32>, vector<12x1536xf32>, vector<4x1536xf32> -> vector<4x1536xf32>
    %69 = arith.addf %64, %68 : vector<4x1536xf32>
    %c0_39 = arith.constant 0 : index
    %c0_40 = arith.constant 0 : index
    %70 = vector.load %arg6[%c0_39, %c0_40] : memref<1x1536xf32, #tpu.memory_space<vmem>>, vector<1x1536xf32>
    %71 = vector.broadcast %70 : vector<1x1536xf32> to vector<4x1536xf32>
    %72 = arith.mulf %69, %71 : vector<4x1536xf32>
    %cst_41 = arith.constant dense<0.000000e+00> : vector<4xf32>
    %73 = vector.multi_reduction <add>, %72, %cst_41 [1] : vector<4x1536xf32> to vector<4xf32>
    %74 = vector.shape_cast %73 : vector<4xf32> to vector<4x1xf32>
    %75 = arith.mulf %72, %72 : vector<4x1536xf32>
    %cst_42 = arith.constant dense<0.000000e+00> : vector<4xf32>
    %76 = vector.multi_reduction <add>, %75, %cst_42 [1] : vector<4x1536xf32> to vector<4xf32>
    %77 = vector.shape_cast %76 : vector<4xf32> to vector<4x1xf32>
    %cst_43 = arith.constant 0.0069444445 : f32
    %78 = vector.broadcast %cst_43 : f32 to vector<4x1xf32>
    %79 = arith.mulf %74, %78 : vector<4x1xf32>
    %cst_44 = arith.constant 0.0069444445 : f32
    %80 = vector.broadcast %cst_44 : f32 to vector<4x1xf32>
    %81 = arith.mulf %77, %80 : vector<4x1xf32>
    %82 = arith.mulf %79, %79 : vector<4x1xf32>
    %83 = arith.subf %81, %82 : vector<4x1xf32>
    %cst_45 = arith.constant 0.000000e+00 : f32
    %84 = vector.broadcast %cst_45 : f32 to vector<4x1xf32>
    %85 = arith.maximumf %83, %84 : vector<4x1xf32>
    %cst_46 = arith.constant 9.99999974E-6 : f32
    %86 = vector.broadcast %cst_46 : f32 to vector<4x1xf32>
    %87 = arith.addf %85, %86 : vector<4x1xf32>
    %88 = math.rsqrt %87 : vector<4x1xf32>
    %89 = arith.mulf %2, %88 : vector<4x1xf32>
    %90 = arith.mulf %79, %89 : vector<4x1xf32>
    %91 = arith.subf %3, %90 : vector<4x1xf32>
    %c0_47 = arith.constant 0 : index
    %c0_48 = arith.constant 0 : index
    %c258 = arith.constant 258 : index
    %92 = vector.load %arg1[%c0_47, %c0_48, %c258] : memref<1x4x2052xf32, #tpu.memory_space<vmem>>, vector<1x4x1536xf32>
    %93 = vector.shape_cast %92 : vector<1x4x1536xf32> to vector<4x1536xf32>
    %94 = vector.broadcast %89 : vector<4x1xf32> to vector<4x1536xf32>
    %95 = arith.mulf %72, %94 : vector<4x1536xf32>
    %96 = vector.broadcast %91 : vector<4x1xf32> to vector<4x1536xf32>
    %97 = arith.addf %95, %96 : vector<4x1536xf32>
    %98 = arith.addf %97, %93 : vector<4x1536xf32>
    %c0_49 = arith.constant 0 : index
    %c0_50 = arith.constant 0 : index
    %c0_51 = arith.constant 0 : index
    %99 = vector.load %arg7[%c0_49, %c0_50, %c0_51] : memref<1x4x1536xf32, #tpu.memory_space<vmem>>, vector<1x4x1536xf32>
    %100 = vector.shape_cast %99 : vector<1x4x1536xf32> to vector<4x1536xf32>
    %101 = vector.shape_cast %98 : vector<4x1536xf32> to vector<1x4x1536xf32>
    tpu.vector_store %arg7[%c0_49, %c0_50, %c0_51], %101 {strides = array<i32>} : memref<1x4x1536xf32, #tpu.memory_space<vmem>>, vector<1x4x1536xf32>,
    return
  }
  func.func @transform_0(%arg0: i32) -> (i32, i32, i32) {
    %c0_i32 = arith.constant 0 : i32
    %c0_i32_0 = arith.constant 0 : i32
    %c0_i32_1 = arith.constant 0 : i32
    return %arg0, %c0_i32, %c0_i32_0 : i32, i32, i32
  }
  func.func @transform_1(%arg0: i32) -> (i32, i32, i32) {
    %c0_i32 = arith.constant 0 : i32
    %c0_i32_0 = arith.constant 0 : i32
    %c0_i32_1 = arith.constant 0 : i32
    %c0_i32_2 = arith.constant 0 : i32
    return %c0_i32, %c0_i32_0, %c0_i32_1 : i32, i32, i32
  }
  func.func @transform_2(%arg0: i32) -> (i32, i32, i32) {
    %c0_i32 = arith.constant 0 : i32
    %c0_i32_0 = arith.constant 0 : i32
    %c0_i32_1 = arith.constant 0 : i32
    %c0_i32_2 = arith.constant 0 : i32
    return %c0_i32, %c0_i32_0, %c0_i32_1 : i32, i32, i32
  }
  func.func @transform_3(%arg0: i32) -> (i32, i32) {
    %c0_i32 = arith.constant 0 : i32
    %c0_i32_0 = arith.constant 0 : i32
    %c0_i32_1 = arith.constant 0 : i32
    return %c0_i32, %c0_i32_0 : i32, i32
  }
  func.func @transform_4(%arg0: i32) -> (i32, i32) {
    %c0_i32 = arith.constant 0 : i32
    %c0_i32_0 = arith.constant 0 : i32
    %c0_i32_1 = arith.constant 0 : i32
    return %c0_i32, %c0_i32_0 : i32, i32
  }
  func.func @transform_5(%arg0: i32) -> (i32, i32) {
    %c0_i32 = arith.constant 0 : i32
    %c0_i32_0 = arith.constant 0 : i32
    %c0_i32_1 = arith.constant 0 : i32
    return %c0_i32, %c0_i32_0 : i32, i32
  }
  func.func @transform_6(%arg0: i32) -> (i32, i32, i32) {
    %c0_i32 = arith.constant 0 : i32
    %c0_i32_0 = arith.constant 0 : i32
    %c0_i32_1 = arith.constant 0 : i32
    return %arg0, %c0_i32, %c0_i32_0 : i32, i32, i32
  }
}

</mosaic_0001>

<bundles_post_ra>
// kernel: tpu_custom_call.1
= control target key start
LH: loop header
LB: loop body
LE: loop exit
PB: predicated region body
PF: predicated region fallthrough
CT: control target
= control target key end

     0   :  { %s6487_s0 = inlined_call_operand.hbm [shape: f32[2,4,2052], index: 0, kind: input, shape index: {}]   ;;  %s6488_s1 = inlined_call_operand.hbm [shape: f32[3,4,12], index: 1, kind: input, shape index: {}]   ;;  %s6489_s2 = inlined_call_operand.hbm [shape: f32[3,4,12], index: 2, kind: input, shape index: {}]   ;;  %s6490_s3 = inlined_call_operand.vmem [shape: f32[4,4], index: 3, kind: input, shape index: {}]   ;;  %s6491_s4 = inlined_call_operand.hbm [shape: f32[1,1794], index: 4, kind: input, shape index: {}]   ;;  %s6492_s5 = inlined_call_operand.hbm [shape: f32[1,1536], index: 5, kind: input, shape index: {}]   ;;  %s6493_s6 = inlined_call_operand.hbm [shape: f32[2,4,1536], index: 6, kind: output, shape index: {}]  }
   0x1   :  { %6501 = sst [smem:[#allocation16_spill]] %s6488_s1 }
   0x2   :  { %11 = vsyncpa [#allocation3], 0 }
   0x3   :  { %13 = vsyncpa [#allocation3 + $0x1], 0 }
   0x4   :  { %14 = vsyncpa [#allocation6], 0 }
   0x5   :  { %15 = vsyncpa [#allocation9], 0 }
   0x6   :  { %16 = vsyncpa [#allocation4], 0 }
   0x7   :  { %18 = vsyncpa [#allocation4 + $0x1], 0  ;;  %s4969_s21 = smov 0   ;;  %s4971_s22 = smov 0  }
   0x8   :  { %s4973_s23 = smov 0   ;;  %s4975_s24 = smov 0  }
   0x9 LB: > { %s4917_s25 = smov [#allocation5]   ;;  %s4990_s27 = sadd.s32 4294967295, %s4915_s24   ;;  %s4915_s24 = sphi %s4975_s24, %s6524_s24   ;;  %s4911_s23 = sphi %s4973_s23, %s6523_s23   ;;  %s4907_s22 = sphi %s4971_s22, %s6522_s22   ;;  %s4903_s21 = sphi %s4969_s21, %s6521_s21  }
   0xa   : > { %s198_s26 = sshll.u32 %s4917_s25, 4  ;;  %p4409_p0 = scmp.ge.s32.totalorder %s4915_s24, 1  ;;  %s199_s26 = int_to_ptr.vmem [resolvable:$true] %s198_s26 }
   0xb   : > { %p6494_p1 = scmp.eq.s32.totalorder %s4990_s27, 0  ;;  %p186_p2 = scmp.lt.s32.totalorder %s4915_s24, 3 }
   0xc   : > { %s4918_s29 = smov [#allocation8]   ;;  %s4919_s8 = smov [#allocation7]  }
   0xd   : > { %p4995_p3 = pnand %p4409_p0, %p186_p2  ;;  %s228_s30 = sshll.u32 %s4918_s29, 4  ;;  %s229_s30 = int_to_ptr.vmem [resolvable:$true] %s228_s30 }
   0xe   : > { %s211_s9 = sshll.u32 %s4919_s8, 4  ;;  %s4722_s10 = scalar_lea.vmem %s199_s26, 192  ;;  %s5008_s9 = int_to_ptr.vmem [resolvable:$true] %s211_s9 }
   0xf   : > { %s6502_s28 = scalar_select %p4995_p3, 1, 0 }
  0x10   : > { %p4602_p5 = pneg %p4995_p3  ;;  %p4723_p8 = scmp.ne.s32.totalorder %s199_s26, %s4722_s10 }
  0x11   : > { %p4730_p11 = scmp.lt.s32.totalorder %s199_s26, %s199_s26  ;;  %p4731_p12 = scmp.lt.s32.totalorder %s4722_s10, %s4722_s10 }
  0x12   : > { %p5004_p6 = pnand %p4602_p5, %p6494_p1 }
  0x13   : > { %p4732_p13 = por %p4731_p12, %p4730_p11 }
  0x14   : > { %p4713_p7 = pneg %p5004_p6 }
  0x16   : > { %p4725_p9 = pnand %p4723_p8, %p4713_p7 }
  0x18   : > { %p4726_p10 = pneg %p4725_p9 }
  0x1a   : > { %p4733_p0 = pnand %p4732_p13, %p4726_p10 }
  0x1c   : > { %4736 = shalt.err (!%p4733_p0)
}
  0x1d   : > { %s4920_s11 = smov 64   ;;  %s4921_s12 = smov 4  }
  0x1e   : > { %s6504_s1 = sld [smem:[#allocation16_spill]]  ;;  %s4748_s15 = scalar_lea.vmem %s229_s30, 240 }
  0x1f   : > { %p4749_p2 = scmp.ne.s32.totalorder %s229_s30, %s4748_s15  ;;  %s4755_s16 = scalar_lea.vmem %s229_s30, 256 }
  0x20   : > { %p4756_p9 = scmp.lt.s32.totalorder %s229_s30, %s229_s30  ;;  %p4757_p11 = scmp.lt.s32.totalorder %s4755_s16, %s4748_s15 }
  0x21   : > { %p4751_p5 = pnand %p4749_p2, %p4713_p7 }
  0x22   : > { %p4758_p10 = por %p4757_p11, %p4756_p9 }
  0x23   : > { %p4752_p8 = pneg %p4751_p5 }
  0x24   : > { %4605 = dma.hbm_to_vmem [thread:$0]  (!%p5004_p6), %s6504_s1, 192, %s199_s26, [#allocation6], %s4920_s11, %s4920_s11, %s4921_s12  }
  0x25   : > { %p4759_p12 = pnand %p4758_p10, %p4752_p8 }
  0x27   : > { %4762 = shalt.err (!%p4759_p12)
}
  0x28   : > { %4611 = dma.hbm_to_vmem [thread:$0]  (!%p5004_p6), %s6491_s4, 240, %s229_s30, [#allocation9]  }
  0x29   : > { %s4774_s19 = scalar_lea.vmem %s5008_s9, 192  ;;  %p4782_p5 = scmp.lt.s32.totalorder %s5008_s9, %s5008_s9 }
  0x2a   : > { %p4775_p13 = scmp.ne.s32.totalorder %s5008_s9, %s4774_s19  ;;  %p4783_p8 = scmp.lt.s32.totalorder %s4774_s19, %s4774_s19 }
  0x2c   : > { %p4777_p0 = pnand %p4775_p13, %p4713_p7  ;;  %p4784_p9 = por %p4783_p8, %p4782_p5 }
  0x2e   : > { %p4778_p2 = pneg %p4777_p0 }
  0x30   : > { %p4785_p11 = pnand %p4784_p9, %p4778_p2 }
  0x32   : > { %4788 = shalt.err (!%p4785_p11)
}
  0x33   : > { %4608 = dma.hbm_to_vmem [thread:$0]  (!%p5004_p6), %s6489_s2, 192, %s5008_s9, [#allocation6], %s4920_s11, %s4920_s11, %s4921_s12  }
  0x34   : > { %s4922_s26 = smov [#allocation10]  }
  0x35   : > { %s239_s29 = sshll.u32 %s4922_s26, 4  ;;  %s240_s29 = int_to_ptr.vmem [resolvable:$true] %s239_s29 }
  0x36   : > { %s4800_s30 = scalar_lea.vmem %s240_s29, 192  ;;  %p4808_p0 = scmp.lt.s32.totalorder %s240_s29, %s240_s29 }
  0x37   : > { %p4801_p10 = scmp.ne.s32.totalorder %s240_s29, %s4800_s30  ;;  %p4809_p2 = scmp.lt.s32.totalorder %s4800_s30, %s4800_s30 }
  0x39   : > { %p4803_p12 = pnand %p4801_p10, %p4713_p7  ;;  %p4810_p5 = por %p4809_p2, %p4808_p0 }
  0x3b   : > { %p4804_p13 = pneg %p4803_p12 }
  0x3d   : > { %p4811_p8 = pnand %p4810_p5, %p4804_p13 }
  0x3f   : > { %4814 = shalt.err (!%p4811_p8)
}
  0x40   : > { %4614 = dma.hbm_to_vmem [thread:$0]  (!%p5004_p6), %s6492_s5, 192, %s240_s29, [#allocation9]  }
  0x41   : > { %s4408_s9 = sadd.s32 4294967294, %s4915_s24   ;;  %s5051_s7 = sadd.s32 1, %s4915_s24  }
  0x42   : > { %s28_s11 = ssub.s32 %s4915_s24, %s5051_s7  ;;  %s31_s12 = sadd.s32 1, %s4911_s23 }
  0x43   : > { %p29_p7 = scmp.eq.s32.totalorder %s28_s11, 0  ;;  %p38_p9 = scmp.ne.s32.totalorder %s4911_s23, %s4907_s22 }
  0x44   : > { %p39_p11 = scmp.eq.s32.totalorder %s4915_s24, 0  ;;  %p44_p10 = scmp.ne.s32.totalorder %s4907_s22, %s4903_s21 }
  0x45   : > { %s5062_s13 = scalar_select %p29_p7, %s4911_s23, %s31_s12  }
  0x46   : > { %p40_p12 = por %p39_p11, %p38_p9  ;;  %p5066_p13 = por %p6494_p1, %p44_p10 }
  0x47   : > { %p173_p6 = scmp.eq.s32.totalorder %s4990_s27, 1  ;;  %p179_p0 = scmp.eq.s32.totalorder %s4408_s9, 1 }
  0x48   : > { %s6505_s14 = scalar_select %p5066_p13, 1, 0 }
  0x49   : > { %p4627_p2 = scmp.lt.s32.totalorder %s4915_s24, 2  ;;  %s250_s15 = sand.u32 1, %s4911_s23  }
  0x4a   : > { %p5073_p5 = por %p173_p6, %p38_p9  ;;  %p5077_p8 = por %p179_p0, %p44_p10 }
  0x4b   : > { %s4577_s18 = smul.u32 68, %s250_s15  ;;  %p5082_p7 = pnand %p4627_p2, %p40_p12 }
  0x4c   : > { %s6506_s16 = scalar_select %p5073_p5, 1, 0 }
  0x4d   : > { %s6507_s17 = scalar_select %p5077_p8, 1, 0 }
  0x4e   : > { %s4578_s19 = smul.u32 1088, %s4915_s24  ;;  %s254_s30 = scalar_lea.vmem [#allocation2], %s4577_s18 }
  0x4f   : > { %s262_s8 = sshll.u32 %s254_s30, 4  ;;  %s251_s10 = scalar_lea.sflag [#allocation3], %s250_s15  ;;  %s263_s8 = int_to_ptr.vmem [resolvable:$true] %s262_s8 }
  0x50   : > { %s5089_s29 = scalar_lea.hbm %s6487_s0, %s4578_s19  ;;  %p4817_p11 = pneg %p5082_p7 }
  0x51   : > { %s4815_s9 = scalar_lea.hbm %s5089_s29, 1088  ;;  %s4820_s25 = scalar_lea.hbm %s6487_s0, 2176 }
  0x52   : > { %p4816_p9 = scmp.ne.s32.totalorder %s5089_s29, %s4815_s9  ;;  %p4821_p6 = scmp.lt.s32.totalorder %s5089_s29, %s6487_s0 }
  0x53   : > { %p4822_p0 = scmp.lt.s32.totalorder %s4820_s25, %s4815_s9 }
  0x54   : > { %p4818_p10 = pnand %p4817_p11, %p4816_p9 }
  0x55   : > { %p4823_p2 = por %p4822_p0, %p4821_p6 }
  0x56   : > { %p4819_p12 = pneg %p4818_p10 }
  0x58   : > { %p4824_p4 = pnand %p4823_p2, %p4819_p12 }
  0x5a   : > { %4827 = shalt.err (!%p4824_p4)
}
  0x5b   : > { %s4828_s18 = scalar_lea.vmem %s263_s8, 1088  ;;  %s4923_s15 = smov [#allocation2]  }
  0x5c   : > { %p4829_p1 = scmp.ne.s32.totalorder %s263_s8, %s4828_s18  ;;  %s4833_s30 = sshll.u32 %s4923_s15, 4  ;;  %s4834_s30 = int_to_ptr.vmem [resolvable:$false] %s4833_s30 }
  0x5d   : > { %s4835_s1 = scalar_lea.vmem %s4834_s30, 2176  ;;  %p4836_p9 = scmp.lt.s32.totalorder %s263_s8, %s4834_s30 }
  0x5e   : > { %p4831_p8 = pnand %p4829_p1, %p4817_p11  ;;  %p4837_p10 = scmp.lt.s32.totalorder %s4835_s1, %s4828_s18 }
  0x60   : > { %p4832_p5 = pneg %p4831_p8  ;;  %p4838_p13 = por %p4837_p10, %p4836_p9 }
  0x62   : > { %p4839_p3 = pnand %p4838_p13, %p4832_p5 }
  0x64   : > { %4842 = shalt.err (!%p4839_p3)
}
  0x65   : > { %4618 = dma.hbm_to_vmem [thread:$0]  (!%p5082_p7), %s5089_s29, 1088, %s263_s8, %s251_s10  }
  0x66   : > { %p6509_p12 = scmp.ne.s32.totalorder %s6502_s28, 0 }
  0x67   : > { %s5108_s9 = sand.u32 (!%p6509_p12), 1, %s4907_s22   ;;  %p6510_p1 = scmp.ne.s32.totalorder (!%p6509_p12), %s6505_s14, 0 }
  0x68   : > { %271 = sbr.rel (%p6509_p12) target bundleno = 1807 (0x70f), region = 44  ;;  %s274_s12 = scalar_lea.sflag (!%p6509_p12), [#allocation3], %s5108_s9 }
  0x69   : > { %s4579_s11 = smul.u32 (!%p6509_p12), 68, %s5108_s9 }
  0x6b   : > { %s5112_s25 = scalar_lea.vmem (!%p6509_p12), [#allocation2], %s4579_s11 }
  0x6d   : > { %4886 = dma.done.wait (%p6510_p1), %s274_s12, 1088  }
  0x6e   : > { %4888 = vsyncadd (%p6510_p1), %s274_s12, 4294966208  ;;  %p6511_p3 = scmp.eq.s32.totalorder %s4990_s27, 0 }
  0x70   : > { %4890 = dma.done.wait (%p6511_p3), [#allocation6], 384   ;;  %p6512_p4 = pmov %p6511_p3 }
  0x71   : > { %p6513_p13 = pmov %p6511_p3 }
  0x72   : > { %4892 = vsyncadd (%p6512_p4), [#allocation6], 4294966912 }
  0x73   : > { %4894 = dma.done.wait (%p6513_p13), [#allocation9], 432   ;;  %p6514_p5 = pmov %p6511_p3 }
  0x74   : > { %v5127_v0 = vld [vmem:[%s5112_s25 + $0x8] sm:$0xff]  ;;  %s4924_s1 = smov 127   ;;  %s4925_s28 = smov 126   ;;  %v5138_v2 = vld [vmem:[%s5112_s25] sm:$0xff]  ;;  %v5151_v5 = vld [vmem:[%s5112_s25 + $0x10] sm:$0xff]  ;;  %v6499_v6 = vmov 0.0  }
  0x75   : > { %4896 = vsyncadd (%p6514_p5), [#allocation9], 4294966864  ;;  %372 = vrot.lane.b32.xlu1 %v5127_v0, %s4924_s1  ;;  %438 = vrot.lane.b32.xlu0 %v5127_v0, %s4925_s28  ;;  %v5135_v1 = vcombine.high %v5127_v0, %v5127_v0  ;;  %v358_v3 = vcombine.low %v5127_v0, %v5127_v0  ;;  %v5148_v4 = vcombine.high %v5138_v2, %v5138_v2  ;;  %v5163_v8 = vld [vmem:[%s5112_s25 + $0x18] sm:$0xff]  ;;  %v5185_v12 = vld [vmem:[%s5112_s25 + $0x20] sm:$0xff]  ;;  %vm468_vm0 = vcmask 1031168   ;;  %s4930_s29 = smov 1  }
  0x76   : > { %604 = vmatprep.mubr.f32.mxu0 %v6499_v6  ;;  %675 = vmatprep.mubr.f32.mxu1 %v6499_v6  ;;  %v5160_v7 = vcombine.high %v5151_v5, %v5151_v5  ;;  %v5171_v9 = vcombine.high %v5163_v8, %v5163_v8  ;;  %v359_v10 = vcombine.low %v5151_v5, %v5151_v5  ;;  %v5195_v14 = vld [vmem:[%s5112_s25 + $0x28] sm:$0xff]  ;;  %v5217_v18 = vld [vmem:[%s5112_s25 + $0x30] sm:$0xff]  ;;  %v5227_v20 = vld [vmem:[%s5112_s25 + $0x38] sm:$0xff]  ;;  %vm485_vm1 = vcmask 1043456   ;;  %s4580_s8 = smul.u32 48, %s5108_s9  ;;  %s4286_s30 = scalar_lea.sflag [#allocation4], %s5108_s9 }
  0x77   : > { %v360_v11 = vcombine.low %v5163_v8, %v5163_v8  ;;  %v5192_v13 = vcombine.high %v5185_v12, %v5185_v12  ;;  %v5203_v15 = vcombine.high %v5195_v14, %v5195_v14  ;;  %v361_v16 = vcombine.low %v5185_v12, %v5185_v12  ;;  %v5252_v24 = vld [vmem:[%s5112_s25 + $0x40] sm:$0xf]  ;;  %v5290_v39 = vld [vmem:[#allocation5 + $0x4] sm:$0xf]  ;;  %s4581_s10 = smul.u32 768, %s4990_s27  ;;  %p6518_p7 = scmp.ne.s32.totalorder %s6506_s16, 0 }
  0x78   : > { %v362_v17 = vcombine.low %v5195_v14, %v5195_v14  ;;  %v5224_v19 = vcombine.high %v5217_v18, %v5217_v18  ;;  %v5235_v21 = vcombine.high %v5227_v20, %v5227_v20  ;;  %v363_v22 = vcombine.low %v5217_v18, %v5217_v18  ;;  %s321_s26 = scalar_lea.vmem [#allocation11], %s4580_s8  ;;  %s4933_s12 = smov [#allocation11]  }
  0x79   : > { %440 = vrot.lane.b32.xlu0 %v5135_v1, %s4925_s28  ;;  %368 = vrot.lane.b32.xlu1 %v5138_v2, %s4924_s1  ;;  %v364_v23 = vcombine.low %v5227_v20, %v5227_v20  ;;  %v365_v25 = vcombine.low %v5252_v24, %v5252_v24  ;;  %v357_v26 = vcombine.low %v5138_v2, %v5138_v2  ;;  %vm400_vm2 = vcmask 1039360   ;;  %s4300_s19 = sshll.u32 %s321_s26, 4  ;;  %s6444_s15 = scalar_lea.hbm %s6493_s6, %s4581_s10  ;;  %s6446_s19 = int_to_ptr.vmem [resolvable:$true] %s4300_s19 }
  0x7a   : > { %vm506_vm3 = vcmask 97280   ;;  %vm4927_vm4 = vmmov 0   ;;  %vm2389_vm5 = vcmask 11264   ;;  %s4843_s11 = scalar_lea.vmem %s6446_s19, 768 }
  0x7b   : > { %p4844_p8 = scmp.ne.s32.totalorder %s6446_s19, %s4843_s11 }
  0x7d   : > { %370 = vrot.lane.b32.xlu1 %v358_v3, %s4924_s1  ;;  %436 = vrot.lane.b32.xlu0 %v5148_v4, %s4925_s28  ;;  %p4845_p11 = pnand %p4844_p8, %p6518_p7 }
  0x7f   : > { %p4846_p6 = pneg %p4845_p11 }
  0x81   : > { %444 = vrot.lane.b32.xlu1 %v5160_v7, %s4925_s28  ;;  %442 = vrot.lane.b32.xlu0 %v5151_v5, %s4925_s28 }
  0x85   : > { %448 = vrot.lane.b32.xlu1 %v5171_v9, %s4925_s28  ;;  %446 = vrot.lane.b32.xlu0 %v5163_v8, %s4925_s28 }
  0x89   : > { %376 = vrot.lane.b32.xlu1 %v5151_v5, %s4924_s1  ;;  %374 = vrot.lane.b32.xlu0 %v359_v10, %s4924_s1 }
  0x8d   : > { %380 = vrot.lane.b32.xlu1 %v5163_v8, %s4924_s1  ;;  %378 = vrot.lane.b32.xlu0 %v360_v11, %s4924_s1 }
  0x91   : > { %452 = vrot.lane.b32.xlu1 %v5192_v13, %s4925_s28  ;;  %450 = vrot.lane.b32.xlu0 %v5185_v12, %s4925_s28 }
  0x95   : > { %456 = vrot.lane.b32.xlu1 %v5203_v15, %s4925_s28  ;;  %454 = vrot.lane.b32.xlu0 %v5195_v14, %s4925_s28 }
  0x99   : > { %384 = vrot.lane.b32.xlu1 %v5185_v12, %s4924_s1  ;;  %382 = vrot.lane.b32.xlu0 %v361_v16, %s4924_s1 }
  0x9d   : > { %388 = vrot.lane.b32.xlu1 %v5195_v14, %s4924_s1  ;;  %386 = vrot.lane.b32.xlu0 %v362_v17, %s4924_s1 }
  0xa1   : > { %460 = vrot.lane.b32.xlu1 %v5224_v19, %s4925_s28  ;;  %458 = vrot.lane.b32.xlu0 %v5217_v18, %s4925_s28 }
  0xa5   : > { %464 = vrot.lane.b32.xlu1 %v5235_v21, %s4925_s28  ;;  %462 = vrot.lane.b32.xlu0 %v5227_v20, %s4925_s28 }
  0xa9   : > { %392 = vrot.lane.b32.xlu1 %v5217_v18, %s4924_s1  ;;  %390 = vrot.lane.b32.xlu0 %v363_v22, %s4924_s1 }
  0xad   : > { %396 = vrot.lane.b32.xlu1 %v5227_v20, %s4924_s1  ;;  %394 = vrot.lane.b32.xlu0 %v364_v23, %s4924_s1 }
  0xb1   : > { %466 = vrot.lane.b32.xlu1 %v5252_v24, %s4925_s28  ;;  %434 = vrot.lane.b32.xlu0 %v5138_v2, %s4925_s28 }
  0xb5   : > { %398 = vrot.lane.b32.xlu1 %v365_v25, %s4924_s1  ;;  %366 = vrot.lane.b32.xlu0 %v357_v26, %s4924_s1 }
  0xe7   : > { %v373_v27 = vpop.permute.xlu1 %372  ;;  %v439_v28 = vpop.permute.xlu0 %438 }
  0xeb   : > { %v441_v29 = vpop.permute.xlu0 %440  ;;  %v5264_v30 = vpop.permute.xlu1 %368 }
  0xec   : > { %v5267_v31 = vsel %vm468_vm0, %v439_v28, %v441_v29 }
  0xed   : > { %4421 = vmatprep.subr.msk.mxu0 %vm485_vm1, %v5267_v31 }
  0xef   : > { %v371_v32 = vpop.permute.xlu1 %370  ;;  %v5271_v33 = vpop.permute.xlu0 %436 }
  0xf0   : > { %v402_v34 = vsel %vm400_vm2, %v5264_v30, %v371_v32  ;;  %v403_v35 = vsel %vm400_vm2, %v371_v32, %v373_v27  ;;  %v5278_v36 = vsel %vm468_vm0, %v5271_v33, %v439_v28 }
  0xf1   : > { %4422 = vmatpush1.msk.msra.mxu0 %vm485_vm1, %v5278_v36  ;;  %v5284_v37 = vsel %vm485_vm1, %v5127_v0, %v403_v35  ;;  %v5288_v38 = vsel %vm485_vm1, %v5148_v4, %v402_v34 }
  0xf2   : > { %570 = vmatprep.subr.mxu0 %v5284_v37 }
  0xf3   : > { %v445_v40 = vpop.permute.xlu1 %444  ;;  %v443_v41 = vpop.permute.xlu0 %442  ;;  %571 = vmatpush1.msra.mxu0 %v5288_v38 }
  0xf4   : > { %v5295_v42 = vsel %vm468_vm0, %v443_v41, %v445_v40  ;;  %v5298_v43 = vsel %vm468_vm0, %v441_v29, %v443_v41  ;;  %4423 = vmatmul.mubr.msk.f32.vlgmr.msra.gmra.mxu0 %vm506_vm3, %v5290_v39 }
  0xf5   : > { %4424 = vmatprep.subr.msk.mxu1 %vm485_vm1, %v5295_v42  ;;  %746 = vmatprep.mubr.f32.mxu0 %v6499_v6 }
  0xf6   : > { %4425 = vmatpush1.msk.msra.mxu1 %vm485_vm1, %v5298_v43 }
  0xf7   : > { %v449_v44 = vpop.permute.xlu1 %448  ;;  %v447_v45 = vpop.permute.xlu0 %446 }
  0xf8   : > { %v5308_v46 = vsel %vm468_vm0, %v445_v40, %v447_v45  ;;  %v5311_v47 = vsel %vm468_vm0, %v447_v45, %v449_v44 }
  0xf9   : > { %4427 = vmatprep.subr.msk.mxu0 %vm485_vm1, %v5311_v47 }
  0xfa   : > { %4428 = vmatpush1.msk.msra.mxu0 %vm485_vm1, %v5308_v46 }
  0xfb   : > { %v377_v48 = vpop.permute.xlu1 %376  ;;  %v375_v49 = vpop.permute.xlu0 %374 }
  0xfc   : > { %v404_v50 = vsel %vm400_vm2, %v373_v27, %v375_v49  ;;  %v405_v51 = vsel %vm400_vm2, %v375_v49, %v377_v48 }
  0xfd   : > { %v5321_v52 = vsel %vm485_vm1, %v5151_v5, %v405_v51  ;;  %v5325_v53 = vsel %vm485_vm1, %v5135_v1, %v404_v50 }
  0xfe   : > { %641 = vmatprep.subr.mxu1 %v5321_v52 }
  0xff   : > { %v381_v54 = vpop.permute.xlu1 %380  ;;  %642 = vmatpush1.msra.mxu1 %v5325_v53  ;;  %v379_v55 = vpop.permute.xlu0 %378 }
 0x100   : > { %v406_v56 = vsel %vm400_vm2, %v377_v48, %v379_v55  ;;  %v407_v57 = vsel %vm400_vm2, %v379_v55, %v381_v54  ;;  %4426 = vmatmul.mubr.msk.f32.vlgmr.msra.gmra.mxu1 %vm506_vm3, %v5290_v39 }
 0x101   : > { %v5335_v58 = vsel %vm485_vm1, %v5163_v8, %v407_v57  ;;  %v5339_v59 = vsel %vm485_vm1, %v5160_v7, %v406_v56  ;;  %817 = vmatprep.mubr.f32.mxu1 %v6499_v6 }
 0x102   : > { %712 = vmatprep.subr.mxu0 %v5335_v58 }
 0x103   : > { %v453_v60 = vpop.permute.xlu1 %452  ;;  %v451_v61 = vpop.permute.xlu0 %450  ;;  %713 = vmatpush1.msra.mxu0 %v5339_v59 }
 0x104   : > { %v5345_v62 = vsel %vm468_vm0, %v449_v44, %v451_v61  ;;  %v5348_v63 = vsel %vm468_vm0, %v451_v61, %v453_v60  ;;  %4429 = vmatmul.mubr.msk.f32.vlgmr.msra.gmra.mxu0 %vm506_vm3, %v5290_v39  ;;  %v503_v61 = vld [vmem:[#allocation5] sm:$0xf] }
 0x105   : > { %4430 = vmatprep.subr.msk.mxu1 %vm485_vm1, %v5348_v63  ;;  %888 = vmatprep.mubr.f32.mxu0 %v6499_v6 }
 0x106   : > { %4431 = vmatpush1.msk.msra.mxu1 %vm485_vm1, %v5345_v62 }
 0x107   : > { %v457_v0 = vpop.permute.xlu1 %456  ;;  %v455_v1 = vpop.permute.xlu0 %454 }
 0x108   : > { %v5358_v3 = vsel %vm468_vm0, %v453_v60, %v455_v1  ;;  %v5361_v4 = vsel %vm468_vm0, %v455_v1, %v457_v0 }
 0x109   : > { %4433 = vmatprep.subr.msk.mxu0 %vm485_vm1, %v5361_v4 }
 0x10a   : > { %4434 = vmatpush1.msk.msra.mxu0 %vm485_vm1, %v5358_v3 }
 0x10b   : > { %v385_v5 = vpop.permute.xlu1 %384  ;;  %v383_v7 = vpop.permute.xlu0 %382 }
 0x10c   : > { %v408_v8 = vsel %vm400_vm2, %v381_v54, %v383_v7  ;;  %v409_v10 = vsel %vm400_vm2, %v383_v7, %v385_v5 }
 0x10d   : > { %v5371_v11 = vsel %vm485_vm1, %v5185_v12, %v409_v10  ;;  %v5375_v16 = vsel %vm485_vm1, %v5171_v9, %v408_v8 }
 0x10e   : > { %783 = vmatprep.subr.mxu1 %v5371_v11 }
 0x10f   : > { %v389_v17 = vpop.permute.xlu1 %388  ;;  %784 = vmatpush1.msra.mxu1 %v5375_v16  ;;  %v387_v22 = vpop.permute.xlu0 %386 }
 0x110   : > { %v410_v23 = vsel %vm400_vm2, %v385_v5, %v387_v22  ;;  %v411_v25 = vsel %vm400_vm2, %v387_v22, %v389_v17  ;;  %4432 = vmatmul.mubr.msk.f32.vlgmr.msra.gmra.mxu1 %vm506_vm3, %v5290_v39 }
 0x111   : > { %v5385_v12 = vsel %vm485_vm1, %v5195_v14, %v411_v25  ;;  %v5389_v9 = vsel %vm485_vm1, %v5192_v13, %v410_v23  ;;  %959 = vmatprep.mubr.f32.mxu1 %v6499_v6 }
 0x112   : > { %854 = vmatprep.subr.mxu0 %v5385_v12 }
 0x113   : > { %v461_v26 = vpop.permute.xlu1 %460  ;;  %v459_v27 = vpop.permute.xlu0 %458  ;;  %855 = vmatpush1.msra.mxu0 %v5389_v9 }
 0x114   : > { %v5395_v28 = vsel %vm468_vm0, %v457_v0, %v459_v27  ;;  %v5398_v29 = vsel %vm468_vm0, %v459_v27, %v461_v26  ;;  %4435 = vmatmul.mubr.msk.f32.vlgmr.msra.gmra.mxu0 %vm506_vm3, %v5290_v39 }
 0x115   : > { %4436 = vmatprep.subr.msk.mxu1 %vm485_vm1, %v5398_v29  ;;  %1030 = vmatprep.mubr.f32.mxu0 %v6499_v6 }
 0x116   : > { %4437 = vmatpush1.msk.msra.mxu1 %vm485_vm1, %v5395_v28 }
 0x117   : > { %v465_v13 = vpop.permute.xlu1 %464  ;;  %v463_v14 = vpop.permute.xlu0 %462 }
 0x118   : > { %v5408_v32 = vsel %vm468_vm0, %v461_v26, %v463_v14  ;;  %v5411_v34 = vsel %vm468_vm0, %v463_v14, %v465_v13 }
 0x119   : > { %4439 = vmatprep.subr.msk.mxu0 %vm485_vm1, %v5411_v34 }
 0x11a   : > { %4440 = vmatpush1.msk.msra.mxu0 %vm485_vm1, %v5408_v32 }
 0x11b   : > { %v393_v35 = vpop.permute.xlu1 %392  ;;  %v391_v40 = vpop.permute.xlu0 %390 }
 0x11c   : > { %v412_v41 = vsel %vm400_vm2, %v389_v17, %v391_v40  ;;  %v413_v44 = vsel %vm400_vm2, %v391_v40, %v393_v35 }
 0x11d   : > { %v5421_v45 = vsel %vm485_vm1, %v5217_v18, %v413_v44  ;;  %v5425_v48 = vsel %vm485_vm1, %v5203_v15, %v412_v41 }
 0x11e   : > { %925 = vmatprep.subr.mxu1 %v5421_v45 }
 0x11f   : > { %v397_v49 = vpop.permute.xlu1 %396  ;;  %926 = vmatpush1.msra.mxu1 %v5425_v48  ;;  %v395_v50 = vpop.permute.xlu0 %394 }
 0x120   : > { %v414_v51 = vsel %vm400_vm2, %v393_v35, %v395_v50  ;;  %v415_v54 = vsel %vm400_vm2, %v395_v50, %v397_v49  ;;  %4556 = vmatprep.subr.mxu1 %v6499_v6  ;;  %4438 = vmatmul.mubr.msk.f32.vlgmr.msra.gmra.mxu1 %vm506_vm3, %v5290_v39  ;;  %v5672_v50 = vld [vmem:[#allocation8 + $0x8] sm:$0x7f] }
 0x121   : > { %v5436_v18 = vsel %vm485_vm1, %v5227_v20, %v415_v54  ;;  %v5440_v15 = vsel %vm485_vm1, %v5224_v19, %v414_v51  ;;  %4560 = vmatprep.mubr.msk.f32.mxu1 %vm4927_vm4, %v6499_v6 }
 0x122   : > { %996 = vmatprep.subr.mxu0 %v5436_v18 }
 0x123   : > { %v5445_v55 = vpop.permute.xlu1 %466  ;;  %v435_v56 = vpop.permute.xlu0 %434  ;;  %997 = vmatpush1.msra.mxu0 %v5440_v15 }
 0x124   : > { %v5450_v57 = vsel %vm468_vm0, %v465_v13, %v5445_v55  ;;  %v469_v20 = vsel %vm468_vm0, %v435_v56, %v5271_v33  ;;  %4444 = vmatprep.subr.msk.mxu0 %vm485_vm1, %v5278_v36  ;;  %4441 = vmatmul.mubr.msk.f32.vlgmr.msra.gmra.mxu0 %vm506_vm3, %v5290_v39 }
 0x125   : > { %4557 = vmatpush3.msk.msra.mxu1 %vm485_vm1, %v5450_v57  ;;  %4445 = vmatpush1.msk.msra.mxu0 %vm485_vm1, %v469_v20 }
 0x126   : > { %1142 = vmatprep.subr.mxu0 %v5288_v38  ;;  %4558 = vmatprep.subr.mxu1 %v6499_v6 }
 0x127   : > { %v5463_v19 = vpop.permute.xlu1 %398  ;;  %v367_v60 = vpop.permute.xlu0 %366  ;;  %1176 = vmatprep.mubr.f32.mxu0 %v6499_v6 }
 0x128   : > { %v416_v33 = vsel %vm400_vm2, %v397_v49, %v5463_v19  ;;  %v401_v36 = vsel %vm400_vm2, %v367_v60, %v5264_v30 }
 0x129   : > { %v5472_v0 = vsel %vm485_vm1, %v5235_v21, %v416_v33  ;;  %v486_v38 = vsel %vm485_vm1, %v5138_v2, %v401_v36  ;;  %v1680_v2 = vld [vmem:[#allocation5 + $0x8] sm:$0xf]  ;;  %v502_v21 = vsel %vm485_vm1, %v5252_v24, %v5463_v19 }
 0x12a   : > { %4559 = vmatpush3.msra.mxu1 %v5472_v0  ;;  %1143 = vmatpush1.msra.mxu0 %v486_v38 }
 0x12b   : > { %4561 = vmatmul.mubr.msk.f32.vlgmr.msra.gmra.mxu1 %vm506_vm3, %v5290_v39  ;;  %4446 = vmatmul.mubr.msk.f32.vlgmr.msra.gmra.mxu0 %vm506_vm3, %v503_v61 }
 0x12c   : > { %4447 = vmatprep.subr.msk.mxu1 %vm485_vm1, %v5298_v43  ;;  %4450 = vmatprep.subr.msk.mxu0 %vm485_vm1, %v5308_v46 }
 0x12d   : > { %4448 = vmatpush1.msk.msra.mxu1 %vm485_vm1, %v5267_v31  ;;  %4451 = vmatpush1.msk.msra.mxu0 %vm485_vm1, %v5295_v42 }
 0x12e   : > { %1213 = vmatprep.subr.mxu1 %v5325_v53  ;;  %1284 = vmatprep.subr.mxu0 %v5339_v59 }
 0x12f   : > { %1214 = vmatpush1.msra.mxu1 %v5284_v37  ;;  %1247 = vmatprep.mubr.f32.mxu1 %v6499_v6 }
 0x130   : > { %1285 = vmatpush1.msra.mxu0 %v5321_v52  ;;  %1318 = vmatprep.mubr.f32.mxu0 %v6499_v6 }
 0x131   : > { %4449 = vmatmul.mubr.msk.f32.vlgmr.msra.gmra.mxu1 %vm506_vm3, %v503_v61  ;;  %4452 = vmatmul.mubr.msk.f32.vlgmr.msra.gmra.mxu0 %vm506_vm3, %v503_v61 }
 0x132   : > { %4453 = vmatprep.subr.msk.mxu1 %vm485_vm1, %v5345_v62  ;;  %4456 = vmatprep.subr.msk.mxu0 %vm485_vm1, %v5358_v3 }
 0x133   : > { %4454 = vmatpush1.msk.msra.mxu1 %vm485_vm1, %v5311_v47  ;;  %4457 = vmatpush1.msk.msra.mxu0 %vm485_vm1, %v5348_v63 }
 0x134   : > { %1355 = vmatprep.subr.mxu1 %v5375_v16  ;;  %1426 = vmatprep.subr.mxu0 %v5389_v9 }
 0x135   : > { %1356 = vmatpush1.msra.mxu1 %v5335_v58  ;;  %1389 = vmatprep.mubr.f32.mxu1 %v6499_v6 }
 0x136   : > { %1427 = vmatpush1.msra.mxu0 %v5371_v11  ;;  %1460 = vmatprep.mubr.f32.mxu0 %v6499_v6 }
 0x137   : > { %4455 = vmatmul.mubr.msk.f32.vlgmr.msra.gmra.mxu1 %vm506_vm3, %v503_v61  ;;  %4458 = vmatmul.mubr.msk.f32.vlgmr.msra.gmra.mxu0 %vm506_vm3, %v503_v61 }
 0x138   : > { %4459 = vmatprep.subr.msk.mxu1 %vm485_vm1, %v5395_v28  ;;  %4462 = vmatprep.subr.msk.mxu0 %vm485_vm1, %v5408_v32 }
 0x139   : > { %4460 = vmatpush1.msk.msra.mxu1 %vm485_vm1, %v5361_v4  ;;  %4463 = vmatpush1.msk.msra.mxu0 %vm485_vm1, %v5398_v29 }
 0x13a   : > { %1497 = vmatprep.subr.mxu1 %v5425_v48  ;;  %1568 = vmatprep.subr.mxu0 %v5440_v15 }
 0x13b   : > { %1498 = vmatpush1.msra.mxu1 %v5385_v12  ;;  %1531 = vmatprep.mubr.f32.mxu1 %v6499_v6 }
 0x13c   : > { %1569 = vmatpush1.msra.mxu0 %v5421_v45  ;;  %1602 = vmatprep.mubr.f32.mxu0 %v6499_v6 }
 0x13d   : > { %4461 = vmatmul.mubr.msk.f32.vlgmr.msra.gmra.mxu1 %vm506_vm3, %v503_v61  ;;  %4464 = vmatmul.mubr.msk.f32.vlgmr.msra.gmra.mxu0 %vm506_vm3, %v503_v61 }
 0x13e   : > { %4563 = vmatprep.subr.mxu1 %v6499_v6  ;;  %4467 = vmatprep.subr.msk.mxu0 %vm485_vm1, %v5298_v43 }
 0x13f   : > { %4564 = vmatpush3.msk.msra.mxu1 %vm485_vm1, %v5411_v34  ;;  %4468 = vmatpush1.msk.msra.mxu0 %vm485_vm1, %v5267_v31 }
 0x140   : > { %4565 = vmatprep.subr.mxu1 %v6499_v6  ;;  %1716 = vmatprep.subr.mxu0 %v5325_v53 }
 0x141   : > { %4566 = vmatpush3.msra.mxu1 %v5436_v18  ;;  %4567 = vmatprep.mubr.msk.f32.mxu1 %vm4927_vm4, %v6499_v6 }
 0x142   : > { %1717 = vmatpush1.msra.mxu0 %v5284_v37  ;;  %1750 = vmatprep.mubr.f32.mxu0 %v6499_v6 }
 0x143   : > { %4568 = vmatmul.mubr.msk.f32.vlgmr.msra.gmra.mxu1 %vm506_vm3, %v503_v61  ;;  %4469 = vmatmul.mubr.msk.f32.vlgmr.msra.gmra.mxu0 %vm506_vm3, %v1680_v2 }
 0x144   : > { %4470 = vmatprep.subr.msk.mxu1 %vm485_vm1, %v5308_v46  ;;  %4473 = vmatprep.subr.msk.mxu0 %vm485_vm1, %v5345_v62 }
 0x145   : > { %4471 = vmatpush1.msk.msra.mxu1 %vm485_vm1, %v5295_v42  ;;  %4474 = vmatpush1.msk.msra.mxu0 %vm485_vm1, %v5311_v47 }
 0x146   : > { %1787 = vmatprep.subr.mxu1 %v5339_v59  ;;  %1858 = vmatprep.subr.mxu0 %v5375_v16 }
 0x147   : > { %1788 = vmatpush1.msra.mxu1 %v5321_v52  ;;  %1821 = vmatprep.mubr.f32.mxu1 %v6499_v6 }
 0x148   : > { %1859 = vmatpush1.msra.mxu0 %v5335_v58  ;;  %1892 = vmatprep.mubr.f32.mxu0 %v6499_v6 }
 0x149   : > { %4472 = vmatmul.mubr.msk.f32.vlgmr.msra.gmra.mxu1 %vm506_vm3, %v1680_v2  ;;  %4475 = vmatmul.mubr.msk.f32.vlgmr.msra.gmra.mxu0 %vm506_vm3, %v1680_v2 }
 0x14a   : > { %4476 = vmatprep.subr.msk.mxu1 %vm485_vm1, %v5358_v3  ;;  %4479 = vmatprep.subr.msk.mxu0 %vm485_vm1, %v5395_v28 }
 0x14b   : > { %4477 = vmatpush1.msk.msra.mxu1 %vm485_vm1, %v5348_v63  ;;  %4480 = vmatpush1.msk.msra.mxu0 %vm485_vm1, %v5361_v4 }
 0x14c   : > { %1929 = vmatprep.subr.mxu1 %v5389_v9  ;;  %2000 = vmatprep.subr.mxu0 %v5425_v48 }
 0x14d   : > { %1930 = vmatpush1.msra.mxu1 %v5371_v11  ;;  %1963 = vmatprep.mubr.f32.mxu1 %v6499_v6  ;;  %v2272_v11 = vlaneseq }
 0x14e   : > { %2001 = vmatpush1.msra.mxu0 %v5385_v12  ;;  %2034 = vmatprep.mubr.f32.mxu0 %v6499_v6 }
 0x14f   : > { %4478 = vmatmul.mubr.msk.f32.vlgmr.msra.gmra.mxu1 %vm506_vm3, %v1680_v2  ;;  %4481 = vmatmul.mubr.msk.f32.vlgmr.msra.gmra.mxu0 %vm506_vm3, %v1680_v2  ;;  %v5634_v25 = vshrl.u32 %v2272_v11, 7 }
 0x150   : > { %4482 = vmatprep.subr.msk.mxu1 %vm485_vm1, %v5408_v32  ;;  %4485 = vmatprep.subr.msk.mxu0 %vm485_vm1, %v5450_v57 }
 0x151   : > { %4483 = vmatpush1.msk.msra.mxu1 %vm485_vm1, %v5398_v29  ;;  %4486 = vmatpush1.msk.msra.mxu0 %vm485_vm1, %v5411_v34  ;;  %v5641_v26 = vsub.s32 0, %v5634_v25  ;;  %v5647_v29 = vld [vmem:[#allocation8] sm:$0xff]  ;;  %v5650_v13 = vsub.s32 1, %v5634_v25  ;;  %v5653_v14 = vsub.s32 2, %v5634_v25  ;;  %v5656_v32 = vsub.s32 4, %v5634_v25 }
 0x152   : > { %2071 = vmatprep.subr.mxu1 %v5440_v15  ;;  %2142 = vmatprep.subr.mxu0 %v5472_v0  ;;  %v5659_v34 = vsub.s32 3, %v5634_v25  ;;  %v5662_v35 = vsub.s32 5, %v5634_v25  ;;  %v5665_v40 = vsub.s32 6, %v5634_v25 }
 0x153   : > { %2072 = vmatpush1.msra.mxu1 %v5421_v45  ;;  %2105 = vmatprep.mubr.f32.mxu1 %v6499_v6  ;;  %v2275_v44 = vrot.slane %v5647_v29, %v5641_v26  ;;  %v6498_v45 = vsub.s32 7, %v5634_v25  ;;  %v2283_v15 = vrot.slane %v5647_v29, %v5653_v14  ;;  %v2291_v57 = vrot.slane %v5647_v29, %v5656_v32 }
 0x154   : > { %2143 = vmatpush1.msra.mxu0 %v5436_v18  ;;  %2176 = vmatprep.mubr.f32.mxu0 %v6499_v6  ;;  %v2279_v18 = vrot.slane %v5647_v29, %v5650_v13  ;;  %v2287_v20 = vrot.slane %v5647_v29, %v5659_v34  ;;  %v2295_v19 = vrot.slane %v5647_v29, %v5662_v35 }
 0x155   : > { %4484 = vmatmul.mubr.msk.f32.vlgmr.msra.gmra.mxu1 %vm506_vm3, %v1680_v2  ;;  %4487 = vmatmul.mubr.msk.f32.vlgmr.msra.gmra.mxu0 %vm506_vm3, %v1680_v2  ;;  %v2299_v60 = vrot.slane %v5647_v29, %v5665_v40  ;;  %v2307_v61 = vrot.slane %v5672_v50, %v5641_v26  ;;  %v5693_v0 = vrot.slane %v5647_v29, %v6498_v45 }
 0x156   : > { %4570 = vmatprep.subr.mxu1 %v6499_v6  ;;  %4574 = vmatprep.mubr.msk.f32.mxu1 %vm4927_vm4, %v6499_v6  ;;  %v2311_v38 = vrot.slane %v5672_v50, %v5650_v13 }
 0x157   : > { %4571 = vmatpush3.msk.msra.mxu1 %vm485_vm1, %v5445_v55  ;;  %2749 = vmatprep.mubr.f32.mxu0 %v6499_v6 }
 0x158   : > { %4572 = vmatprep.subr.mxu1 %v6499_v6 }
 0x159   : > { %4573 = vmatpush3.msra.mxu1 %v502_v21  ;;  %v2323_v21 = vrot.slane %v5672_v50, %v5656_v32 }
 0x15a   : > { %4575 = vmatmul.mubr.msk.f32.vlgmr.msra.gmra.mxu1 %vm506_vm3, %v1680_v2  ;;  %v2315_v2 = vrot.slane %v5672_v50, %v5653_v14 }
 0x15b   : > { %2820 = vmatprep.mubr.f32.mxu1 %v6499_v6 }
 0x1b4   : > { %v606_v30 = vpop.f32.mrf.mxu0 }
 0x1b6   : > { %v608_v31 = vpop.f32.mrf.mxu0 }
 0x1c0   : > { %v677_v37 = vpop.f32.mrf.mxu1 }
 0x1c2   : > { %v5606_v42 = vpop.f32.mrf.mxu1 }
 0x1c4   : > { %v5604_v39 = vpop.f32.mrf.mxu0 }
 0x1c6   : > { %v5608_v43 = vpop.f32.mrf.mxu0 }
 0x1d0   : > { %v5610_v46 = vpop.f32.mrf.mxu1 }
 0x1d2   : > { %v5614_v24 = vpop.f32.mrf.mxu1 }
 0x1d4   : > { %v5612_v47 = vpop.f32.mrf.mxu0 }
 0x1d6   : > { %v5616_v52 = vpop.f32.mrf.mxu0 }
 0x1e0   : > { %v5618_v53 = vpop.f32.mrf.mxu1 }
 0x1e2   : > { %v5622_v59 = vpop.f32.mrf.mxu1 }
 0x1e4   : > { %v5620_v58 = vpop.f32.mrf.mxu0 }
 0x1e6   : > { %v5624_v62 = vpop.f32.mrf.mxu0 }
 0x1eb   : > { %v5626_v63 = vpop.f32.mrf.mxu1  ;;  %v1178_v1 = vpop.f32.mrf.mxu0 }
 0x1ec   : > { %v1179_v41 = vadd.f32 %v1178_v1, %v606_v30  ;;  %v2319_v30 = vrot.slane %v5672_v50, %v5659_v34 }
 0x1ed   : > { %v4562_v3 = vpop.f32.mrf.mxu1  ;;  %v1180_v4 = vpop.f32.mrf.mxu0 }
 0x1ee   : > { %v1181_v51 = vadd.f32 %v1180_v4, %v608_v31  ;;  %v2327_v4 = vrot.slane %v5672_v50, %v5662_v35 }
 0x1f1   : > { %v1249_v5 = vpop.f32.mrf.mxu1  ;;  %v1320_v7 = vpop.f32.mrf.mxu0 }
 0x1f2   : > { %v1250_v31 = vadd.f32 %v1249_v5, %v677_v37  ;;  %v1321_v11 = vadd.f32 %v1320_v7, %v5604_v39 }
 0x1f3   : > { %v1251_v8 = vpop.f32.mrf.mxu1  ;;  %v1322_v10 = vpop.f32.mrf.mxu0 }
 0x1f7   : > { %v1391_v16 = vpop.f32.mrf.mxu1  ;;  %v5628_v17 = vpop.f32.mrf.mxu0 }
 0x1f8   : > { %v1392_v39 = vadd.f32 %v1391_v16, %v5610_v46 }
 0x1f9   : > { %v5630_v22 = vpop.f32.mrf.mxu1  ;;  %v5632_v23 = vpop.f32.mrf.mxu0 }
 0x1fd   : > { %v5636_v12 = vpop.f32.mrf.mxu1  ;;  %v5638_v9 = vpop.f32.mrf.mxu0 }
 0x1ff   : > { %v5643_v27 = vpop.f32.mrf.mxu1  ;;  %v5645_v28 = vpop.f32.mrf.mxu0 }
 0x203   : > { %v5670_v48 = vpop.f32.mrf.mxu1  ;;  %v1752_v49 = vpop.f32.mrf.mxu0 }
 0x204   : > { %v2253_v54 = vadd.f32 %v1752_v49, %v1179_v41  ;;  %v1252_v41 = vadd.f32 %v1251_v8, %v5606_v42 }
 0x205   : > { %v4569_v55 = vpop.f32.mrf.mxu1  ;;  %v1754_v56 = vpop.f32.mrf.mxu0 }
 0x206   : > { %v5686_v33 = vmul.f32 %v2275_v44, %v2253_v54  ;;  %v2254_v36 = vadd.f32 %v1754_v56, %v1181_v51  ;;  %v1323_v44 = vadd.f32 %v1322_v10, %v5608_v43  ;;  %v1463_v54 = vadd.f32 %v5628_v17, %v5612_v47 }
 0x207   : > { %v1534_v47 = vadd.f32 %v5636_v12, %v5618_v53 }
 0x208   : > { %v2394_v1 = vmul.f32 %v5686_v33, %v5686_v33  ;;  %v5705_v3 = vmul.f32 %v2279_v18, %v2254_v36  ;;  %v2362_v37 = vsel %vm485_vm1, %v5686_v33, 0.0 }
 0x209   : > { %v1823_v49 = vpop.f32.mrf.mxu1  ;;  %v1894_v51 = vpop.f32.mrf.mxu0 }
 0x20a   : > { %v2363_v5 = vsel %vm485_vm1, %v5705_v3, 0.0  ;;  %v2395_v18 = vmul.f32 %v5705_v3, %v5705_v3  ;;  %v2255_v55 = vadd.f32 %v1823_v49, %v1250_v31  ;;  %v2409_v42 = vsel %vm485_vm1, %v2394_v1, 0.0 }
 0x20b   : > { %v2364_v43 = vadd.f32 %v2363_v5, %v2362_v37  ;;  %v2257_v7 = vadd.f32 %v1894_v51, %v1321_v11  ;;  %v1825_v8 = vpop.f32.mrf.mxu1  ;;  %v1896_v10 = vpop.f32.mrf.mxu0  ;;  %v1394_v31 = vadd.f32 %v5630_v22, %v5614_v24  ;;  %v1605_v24 = vadd.f32 %v5638_v9, %v5620_v58 }
 0x20c   : > { %v2410_v56 = vsel %vm485_vm1, %v2395_v18, 0.0  ;;  %v5723_v36 = vmul.f32 %v2283_v15, %v2255_v55  ;;  %v2256_v45 = vadd.f32 %v1825_v8, %v1252_v41  ;;  %v2258_v6 = vadd.f32 %v1896_v10, %v1323_v44 }
 0x20d   : > { %v2411_v49 = vadd.f32 %v2410_v56, %v2409_v42  ;;  %v5729_v46 = vmul.f32 %v2291_v57, %v2257_v7  ;;  %v1465_v41 = vadd.f32 %v5632_v23, %v5616_v52 }
 0x20e   : > { %v2365_v16 = vsel %vm485_vm1, %v5723_v36, 0.0  ;;  %v2396_v1 = vmul.f32 %v5723_v36, %v5723_v36  ;;  %v5735_v11 = vmul.f32 %v2287_v20, %v2256_v45  ;;  %v5737_v15 = vmul.f32 %v2295_v19, %v2258_v6 }
 0x20f   : > { %v2366_v17 = vadd.f32 %v2365_v16, %v2364_v43  ;;  %v1965_v22 = vpop.f32.mrf.mxu1  ;;  %v2036_v57 = vpop.f32.mrf.mxu0  ;;  %v2398_v45 = vmul.f32 %v5729_v46, %v5729_v46  ;;  %v2369_v53 = vsel %vm485_vm1, %v5729_v46, 0.0  ;;  %v1607_v16 = vadd.f32 %v5645_v28, %v5624_v62 }
 0x210   : > { %v2412_v44 = vsel %vm485_vm1, %v2396_v1, 0.0  ;;  %v2367_v6 = vsel %vm485_vm1, %v5735_v11, 0.0  ;;  %v2397_v52 = vmul.f32 %v5735_v11, %v5735_v11  ;;  %v2399_v58 = vmul.f32 %v5737_v15, %v5737_v15 }
 0x211   : > { %v2413_v23 = vadd.f32 %v2412_v44, %v2411_v49  ;;  %v2368_v12 = vadd.f32 %v2367_v6, %v2366_v17  ;;  %v1967_v9 = vpop.f32.mrf.mxu1  ;;  %v2038_v20 = vpop.f32.mrf.mxu0  ;;  %v2259_v51 = vadd.f32 %v1965_v22, %v1392_v39  ;;  %v2261_v37 = vadd.f32 %v2036_v57, %v1463_v54 }
 0x212   : > { %v2414_v19 = vsel %vm485_vm1, %v2397_v52, 0.0  ;;  %v2260_v5 = vadd.f32 %v1967_v9, %v1394_v31  ;;  %v2371_v42 = vsel %vm485_vm1, %v5737_v15, 0.0  ;;  %v2262_v43 = vadd.f32 %v2038_v20, %v1465_v41 }
 0x213   : > { %v2415_v18 = vadd.f32 %v2414_v19, %v2413_v23  ;;  %v2370_v55 = vadd.f32 %v2369_v53, %v2368_v12  ;;  %v2416_v7 = vsel %vm485_vm1, %v2398_v45, 0.0  ;;  %v5763_v8 = vmul.f32 %v2299_v60, %v2259_v51 }
 0x214   : > { %v5768_v10 = vmul.f32 %v2307_v61, %v2261_v37  ;;  %v5771_v54 = vmul.f32 %v5693_v0, %v2260_v5  ;;  %v1536_v39 = vadd.f32 %v5643_v27, %v5622_v59  ;;  %v5778_v49 = vmul.f32 %v2311_v38, %v2262_v43 }
 0x215   : > { %v2372_v56 = vadd.f32 %v2371_v42, %v2370_v55  ;;  %v2417_v31 = vadd.f32 %v2416_v7, %v2415_v18  ;;  %v2107_v29 = vpop.f32.mrf.mxu1  ;;  %v2178_v60 = vpop.f32.mrf.mxu0  ;;  %v2418_v61 = vsel %vm485_vm1, %v2399_v58, 0.0  ;;  %v2373_v0 = vsel %vm485_vm1, %v5763_v8, 0.0 }
 0x216   : > { %v2400_v59 = vmul.f32 %v5763_v8, %v5763_v8  ;;  %v2402_v41 = vmul.f32 %v5768_v10, %v5768_v10  ;;  %v2401_v38 = vmul.f32 %v5771_v54, %v5771_v54  ;;  %v1676_v62 = vadd.f32 %v5670_v48, %v5626_v63 }
 0x217   : > { %v2419_v27 = vadd.f32 %v2418_v61, %v2417_v31  ;;  %v2374_v1 = vadd.f32 %v2373_v0, %v2372_v56  ;;  %v2109_v17 = vpop.f32.mrf.mxu1  ;;  %v2180_v22 = vpop.f32.mrf.mxu0  ;;  %v2377_v57 = vsel %vm485_vm1, %v5768_v10, 0.0  ;;  %v2375_v44 = vsel %vm485_vm1, %v5771_v54, 0.0 }
 0x218   : > { %v2420_v28 = vsel %vm485_vm1, %v2400_v59, 0.0  ;;  %v2403_v52 = vmul.f32 %v5778_v49, %v5778_v49  ;;  %v2263_v23 = vadd.f32 %v2107_v29, %v1534_v47  ;;  %v2422_v53 = vsel %vm485_vm1, %v2401_v38, 0.0 }
 0x219   : > { %v2421_v45 = vadd.f32 %v2420_v28, %v2419_v27  ;;  %v2376_v6 = vadd.f32 %v2375_v44, %v2374_v1  ;;  %v2265_v12 = vadd.f32 %v2178_v60, %v1605_v24  ;;  %v2264_v58 = vadd.f32 %v2109_v17, %v1536_v39 }
 0x21a   : > { %v2266_v9 = vadd.f32 %v2180_v22, %v1607_v16  ;;  %v2249_v63 = vpop.f32.mrf.mxu1  ;;  %v2424_v48 = vsel %vm485_vm1, %v2402_v41, 0.0  ;;  %v5805_v51 = vmul.f32 %v2315_v2, %v2263_v23  ;;  %v2379_v37 = vsel %vm485_vm1, %v5778_v49, 0.0 }
 0x21b   : > { %v2423_v20 = vadd.f32 %v2422_v53, %v2421_v45  ;;  %v2378_v19 = vadd.f32 %v2377_v57, %v2376_v6  ;;  %v5812_v47 = vmul.f32 %v2323_v21, %v2265_v12  ;;  %v5817_v24 = vmul.f32 %v2319_v30, %v2264_v58 }
 0x21c   : > { %v2267_v5 = vadd.f32 %v2249_v63, %v1676_v62  ;;  %v4576_v18 = vpop.f32.mrf.mxu1  ;;  %v2404_v2 = vmul.f32 %v5805_v51, %v5805_v51  ;;  %v2426_v43 = vsel %vm485_vm1, %v2403_v52, 0.0  ;;  %v2381_v7 = vsel %vm485_vm1, %v5805_v51, 0.0 }
 0x21d   : > { %v2380_v55 = vadd.f32 %v2379_v37, %v2378_v19  ;;  %v2425_v42 = vadd.f32 %v2424_v48, %v2423_v20  ;;  %v2405_v21 = vmul.f32 %v5817_v24, %v5817_v24  ;;  %v5829_v30 = vmul.f32 %v2327_v4, %v2266_v9  ;;  %v5856_v18 = vld [vmem:[%s6490_s3] sm:$0xf] }
 0x21e   : > { %v2428_v31 = vsel %vm485_vm1, %v2404_v2, 0.0  ;;  %v2406_v29 = vmul.f32 %v5812_v47, %v5812_v47  ;;  %v2383_v60 = vsel %vm485_vm1, %v5817_v24, 0.0  ;;  %v6515_v16 = vrot.slane %v5672_v50, %v5665_v40 }
 0x21f   : > { %v2427_v39 = vadd.f32 %v2426_v43, %v2425_v42  ;;  %v2382_v56 = vadd.f32 %v2381_v7, %v2380_v55  ;;  %v2385_v4 = vsel %vm485_vm1, %v5812_v47, 0.0  ;;  %v2407_v27 = vmul.f32 %v5829_v30, %v5829_v30 }
 0x220   : > { %v5839_v61 = vmul.f32 %v6515_v16, %v2267_v5  ;;  %v2430_v1 = vsel %vm485_vm1, %v2405_v21, 0.0  ;;  %v2387_v17 = vsel %vm485_vm1, %v5829_v30, 0.0  ;;  %v2432_v22 = vsel %vm485_vm1, %v2406_v29, 0.0 }
 0x221   : > { %v2384_v0 = vadd.f32 %v2383_v60, %v2382_v56  ;;  %v2429_v59 = vadd.f32 %v2428_v31, %v2427_v39  ;;  %v2434_v44 = vsel %vm485_vm1, %v2407_v27, 0.0  ;;  %v4928_v53 = vmov 0  }
 0x222   : > { %v2408_v50 = vmul.f32 %v5839_v61, %v5839_v61  ;;  %v2390_v57 = vsel %vm2389_vm5, %v5839_v61, 0.0  ;;  %4680 = vset.pattern.permute.xlu1 %v4928_v53  ;;  %v4929_v5 = vmov 1  }
 0x223   : > { %v2386_v41 = vadd.f32 %v2385_v4, %v2384_v0  ;;  %v2431_v38 = vadd.f32 %v2430_v1, %v2429_v59  ;;  %4681 = vset.pattern.permute.xlu0 %v4929_v5 }
 0x224   : > { %v2436_v52 = vsel %vm2389_vm5, %v2408_v50, 0.0 }
 0x225   : > { %v2388_v62 = vadd.f32 %v2387_v17, %v2386_v41  ;;  %v2433_v28 = vadd.f32 %v2432_v22, %v2431_v38 }
 0x227   : > { %v2391_v45 = vadd.f32 %v2390_v57, %v2388_v62  ;;  %v2435_v6 = vadd.f32 %v2434_v44, %v2433_v28 }
 0x229   : > { %2392 = vadd.xlane.f32.xlu0 %v2391_v45  ;;  %v2437_v23 = vadd.f32 %v2436_v52, %v2435_v6 }
 0x22b   : > { %2438 = vadd.xlane.f32.xlu1 %v2437_v23 }
 0x2b2   : > { %v2393_v12 = vpop.xlane.xlu0 %2392 }
 0x2b3   : > { %v2440_v58 = vmul.f32 0.0051020407, %v2393_v12 }
 0x2b4   : > { %v2439_v9 = vpop.xlane.xlu1 %2438 }
 0x2b5   : > { %v2442_v63 = vmul.f32 %v2440_v58, %v2440_v58  ;;  %v2441_v48 = vmul.f32 0.0051020407, %v2439_v9 }
 0x2b7   : > { %v2443_v20 = vsub.f32 %v2441_v48, %v2442_v63 }
 0x2b9   : > { %v2444_v19 = vmax.f32 %v2443_v20, 0.0 }
 0x2bb   : > { %v2445_v37 = vadd.f32 1e-05, %v2444_v19 }
 0x2bd   : > { %4707 = vrsqrt.f32 %v2445_v37 }
 0x2ca   : > { %v4708_v55 = vpop.eup %4707 }
 0x2cb   : > { %v2447_v42 = vmul.f32 %v4708_v55, %v5856_v18 }
 0x2cd   : > { %2456 = vperm.xlu1 %4680, %v2447_v42   ;;  %v2448_v2 = vmul.f32 %v2447_v42, %v2440_v58 }
 0x2cf   : > { %2450 = vrot.lane.b32.xlu0 %v2448_v2, %s4930_s29 }
 0x341   : > { %v2451_v43 = vpop.permute.xlu0 %2450 }
 0x342   : > { %v2453_v7 = vsub.f32 %v5856_v18, %v2451_v43 }
 0x344   : > { %2476 = vperm.xlu0 %4681, %v2453_v7  }
 0x348   : > { %v5861_v21 = vpop.permute.xlu1 %2456 }
 0x349   : > { %v2461_v39 = vmul.f32 %v5861_v21, %v5723_v36  ;;  %v2460_v56 = vmul.f32 %v5861_v21, %v5705_v3  ;;  %v2462_v16 = vmul.f32 %v5861_v21, %v5735_v11  ;;  %v2463_v0 = vmul.f32 %v5861_v21, %v5729_v46 }
 0x34a   : > { %v2464_v11 = vmul.f32 %v5861_v21, %v5737_v15  ;;  %v2465_v46 = vmul.f32 %v5861_v21, %v5763_v8  ;;  %v2466_v15 = vmul.f32 %v5861_v21, %v5771_v54  ;;  %v2467_v8 = vmul.f32 %v5861_v21, %v5768_v10 }
 0x34b   : > { %v2468_v54 = vmul.f32 %v5861_v21, %v5778_v49  ;;  %v2469_v10 = vmul.f32 %v5861_v21, %v5805_v51  ;;  %v2470_v49 = vmul.f32 %v5861_v21, %v5817_v24  ;;  %v2471_v51 = vmul.f32 %v5861_v21, %v5812_v47 }
 0x34c   : > { %v2472_v24 = vmul.f32 %v5861_v21, %v5829_v30  ;;  %v2459_v2 = vmul.f32 %v5861_v21, %v5686_v33 }
 0x3bf   : > { %v5867_v31 = vpop.permute.xlu0 %2476 }
 0x3c0   : > { %v2481_v29 = vadd.f32 %v5867_v31, %v2461_v39  ;;  %v2480_v60 = vadd.f32 %v5867_v31, %v2460_v56  ;;  %v2482_v36 = vadd.f32 %v5867_v31, %v2462_v16  ;;  %v2483_v3 = vadd.f32 %v5867_v31, %v2463_v0 }
 0x3c1   : > { %v2484_v41 = vadd.f32 %v5867_v31, %v2464_v11  ;;  %v2485_v38 = vadd.f32 %v5867_v31, %v2465_v46  ;;  %v2486_v22 = vadd.f32 %v5867_v31, %v2466_v15  ;;  %v2487_v62 = vadd.f32 %v5867_v31, %v2467_v8 }
 0x3c2   : > { %v5875_v59 = vmax.f32 %v2481_v29, 0.0  ;;  %v5877_v4 = vmax.f32 %v2480_v60, 0.0  ;;  %v5889_v27 = vmax.f32 %v2482_v36, 0.0  ;;  %v5891_v1 = vmax.f32 %v2483_v3, 0.0 }
 0x3c3   : > { %v5903_v17 = vmax.f32 %v2484_v41, 0.0  ;;  %v5905_v50 = vmax.f32 %v2485_v38, 0.0  ;;  %v5917_v28 = vmax.f32 %v2486_v22, 0.0  ;;  %v5919_v57 = vmax.f32 %v2487_v62, 0.0 }
 0x3c4   : > { %2601 = vrot.lane.b32.xlu1 %v5875_v59, %s4925_s28  ;;  %2599 = vrot.lane.b32.xlu0 %v5877_v4, %s4925_s28  ;;  %v2488_v44 = vadd.f32 %v5867_v31, %v2468_v54  ;;  %v2489_v45 = vadd.f32 %v5867_v31, %v2469_v10  ;;  %v2490_v23 = vadd.f32 %v5867_v31, %v2470_v49  ;;  %v2526_v63 = vrot.slane %v5875_v59, 4 }
 0x3c5   : > { %v2491_v53 = vadd.f32 %v5867_v31, %v2471_v51  ;;  %v2492_v58 = vadd.f32 %v5867_v31, %v2472_v24  ;;  %v2527_v30 = vrot.slane %v5889_v27, 4  ;;  %v2528_v48 = vrot.slane %v5891_v1, 4 }
 0x3c6   : > { %v5931_v6 = vmax.f32 %v2488_v44, 0.0  ;;  %v5933_v52 = vmax.f32 %v2489_v45, 0.0  ;;  %v5943_v12 = vmax.f32 %v2490_v23, 0.0  ;;  %v2530_v20 = vrot.slane %v5905_v50, 4 }
 0x3c7   : > { %v5945_v47 = vmax.f32 %v2491_v53, 0.0  ;;  %v5952_v9 = vmax.f32 %v2492_v58, 0.0  ;;  %v2525_v19 = vrot.slane %v5877_v4, 4  ;;  %v2532_v37 = vrot.slane %v5919_v57, 4 }
 0x3c8   : > { %2603 = vrot.lane.b32.xlu1 %v5889_v27, %s4925_s28  ;;  %2605 = vrot.lane.b32.xlu0 %v5891_v1, %s4925_s28  ;;  %v2529_v5 = vrot.slane %v5903_v17, 4  ;;  %v2534_v55 = vrot.slane %v5933_v52, 4  ;;  %v2531_v42 = vrot.slane %v5917_v28, 4  ;;  %v2533_v7 = vrot.slane %v5931_v6, 4 }
 0x3c9   : > { %v2536_v43 = vrot.slane %v5945_v47, 4  ;;  %v2479_v39 = vadd.f32 %v5867_v31, %v2459_v2  ;;  %v2473_v56 = vmul.f32 %v5861_v21, %v5839_v61  ;;  %v2535_v29 = vrot.slane %v5943_v12, 4 }
 0x3ca   : > { %v2537_v33 = vrot.slane %v5952_v9, 4 }
 0x3cb   : > { %v5984_v60 = vmax.f32 %v2479_v39, 0.0  ;;  %v2493_v16 = vadd.f32 %v5867_v31, %v2473_v56 }
 0x3cc   : > { %2607 = vrot.lane.b32.xlu1 %v5903_v17, %s4925_s28  ;;  %2609 = vrot.lane.b32.xlu0 %v5905_v50, %s4925_s28 }
 0x3cd   : > { %v2508_v0 = vmax.f32 %v2493_v16, 0.0  ;;  %v2524_v61 = vrot.slane %v5984_v60, 4 }
 0x3cf   : > { %v2538_v21 = vrot.slane %v2508_v0, 4 }
 0x3d0   : > { %2611 = vrot.lane.b32.xlu1 %v5917_v28, %s4925_s28  ;;  %2613 = vrot.lane.b32.xlu0 %v5919_v57, %s4925_s28 }
 0x3d4   : > { %2615 = vrot.lane.b32.xlu1 %v5931_v6, %s4925_s28  ;;  %2617 = vrot.lane.b32.xlu0 %v5933_v52, %s4925_s28 }
 0x3d8   : > { %2619 = vrot.lane.b32.xlu1 %v5943_v12, %s4925_s28  ;;  %2621 = vrot.lane.b32.xlu0 %v5945_v47, %s4925_s28 }
 0x3dc   : > { %2623 = vrot.lane.b32.xlu1 %v5952_v9, %s4925_s28  ;;  %2543 = vrot.lane.b32.xlu0 %v2526_v63, %s4924_s1 }
 0x3e0   : > { %2545 = vrot.lane.b32.xlu1 %v2527_v30, %s4924_s1  ;;  %2547 = vrot.lane.b32.xlu0 %v2528_v48, %s4924_s1 }
 0x3e4   : > { %2551 = vrot.lane.b32.xlu0 %v2530_v20, %s4924_s1  ;;  %2541 = vrot.lane.b32.xlu1 %v2525_v19, %s4924_s1  ;;  %v6031_v19 = vld [vmem:[#allocation7 + $0x4] sm:$0xf] }
 0x3e8   : > { %2555 = vrot.lane.b32.xlu0 %v2532_v37, %s4924_s1  ;;  %2549 = vrot.lane.b32.xlu1 %v2529_v5, %s4924_s1 }
 0x3ec   : > { %2559 = vrot.lane.b32.xlu0 %v2534_v55, %s4924_s1  ;;  %2553 = vrot.lane.b32.xlu1 %v2531_v42, %s4924_s1 }
 0x3f0   : > { %2563 = vrot.lane.b32.xlu0 %v2536_v43, %s4924_s1  ;;  %2557 = vrot.lane.b32.xlu1 %v2533_v7, %s4924_s1  ;;  %v6516_v43 = vmov 0.0  }
 0x3f4   : > { %2561 = vrot.lane.b32.xlu1 %v2535_v29, %s4924_s1  ;;  %2597 = vrot.lane.b32.xlu0 %v5984_v60, %s4925_s28 }
 0x3f8   : > { %2565 = vrot.lane.b32.xlu1 %v2537_v33, %s4924_s1  ;;  %2625 = vrot.lane.b32.xlu0 %v2508_v0, %s4925_s28 }
 0x3fc   : > { %2539 = vrot.lane.b32.xlu1 %v2524_v61, %s4924_s1 }
 0x400   : > { %2567 = vrot.lane.b32.xlu1 %v2538_v21, %s4924_s1 }
 0x436   : > { %v2602_v31 = vpop.permute.xlu1 %2601  ;;  %v5996_v36 = vpop.permute.xlu0 %2599 }
 0x437   : > { %v6003_v41 = vsel %vm468_vm0, %v5996_v36, %v2602_v31 }
 0x43a   : > { %v2604_v3 = vpop.permute.xlu1 %2603  ;;  %v2606_v11 = vpop.permute.xlu0 %2605 }
 0x43b   : > { %v5999_v46 = vsel %vm468_vm0, %v2602_v31, %v2604_v3  ;;  %v6013_v22 = vsel %vm468_vm0, %v2604_v3, %v2606_v11 }
 0x43c   : > { %4490 = vmatprep.subr.msk.mxu0 %vm485_vm1, %v5999_v46 }
 0x43d   : > { %4491 = vmatpush1.msk.msra.mxu0 %vm485_vm1, %v6003_v41 }
 0x43e   : > { %v2608_v38 = vpop.permute.xlu1 %2607  ;;  %v2610_v15 = vpop.permute.xlu0 %2609 }
 0x43f   : > { %v6010_v8 = vsel %vm468_vm0, %v2606_v11, %v2608_v38 }
 0x440   : > { %4493 = vmatprep.subr.msk.mxu1 %vm485_vm1, %v6010_v8 }
 0x441   : > { %4494 = vmatpush1.msk.msra.mxu1 %vm485_vm1, %v6013_v22 }
 0x442   : > { %v2612_v62 = vpop.permute.xlu1 %2611  ;;  %v2614_v54 = vpop.permute.xlu0 %2613 }
 0x443   : > { %v6038_v5 = vsel %vm468_vm0, %v2610_v15, %v2612_v62  ;;  %v6068_v0 = vsel %vm468_vm0, %v2612_v62, %v2614_v54 }
 0x446   : > { %v2616_v10 = vpop.permute.xlu1 %2615  ;;  %v2618_v44 = vpop.permute.xlu0 %2617 }
 0x447   : > { %v6063_v56 = vsel %vm468_vm0, %v2614_v54, %v2616_v10 }
 0x44a   : > { %v2620_v45 = vpop.permute.xlu1 %2619  ;;  %v2622_v49 = vpop.permute.xlu0 %2621 }
 0x44b   : > { %v6088_v21 = vsel %vm468_vm0, %v2618_v44, %v2620_v45 }
 0x44e   : > { %v6019_v51 = vpop.permute.xlu1 %2623  ;;  %v2544_v23 = vpop.permute.xlu0 %2543 }
 0x44f   : > { %v6114_v62 = vsel %vm468_vm0, %v2622_v49, %v6019_v51 }
 0x452   : > { %v2546_v53 = vpop.permute.xlu1 %2545  ;;  %v2548_v24 = vpop.permute.xlu0 %2547 }
 0x453   : > { %v2571_v58 = vsel %vm400_vm2, %v2544_v23, %v2546_v53  ;;  %v2572_v55 = vsel %vm400_vm2, %v2546_v53, %v2548_v24 }
 0x454   : > { %v6024_v63 = vsel %vm485_vm1, %v5875_v59, %v2571_v58  ;;  %v6042_v59 = vsel %vm468_vm0, %v2608_v38, %v2610_v15  ;;  %v6060_v39 = vsel %vm485_vm1, %v5889_v27, %v2572_v55 }
 0x455   : > { %2715 = vmatprep.subr.mxu0 %v6024_v63 }
 0x456   : > { %v2552_v30 = vpop.permute.xlu0 %2551  ;;  %v6027_v48 = vpop.permute.xlu1 %2541 }
 0x457   : > { %v2570_v20 = vsel %vm400_vm2, %v6027_v48, %v2544_v23 }
 0x458   : > { %v6035_v37 = vsel %vm485_vm1, %v5877_v4, %v2570_v20 }
 0x459   : > { %2716 = vmatpush1.msra.mxu0 %v6035_v37 }
 0x45a   : > { %v2556_v42 = vpop.permute.xlu0 %2555  ;;  %4496 = vmatprep.subr.msk.mxu0 %vm485_vm1, %v6038_v5  ;;  %v2550_v2 = vpop.permute.xlu1 %2549  ;;  %4492 = vmatmul.mubr.msk.f32.vlgmr.msra.gmra.mxu0 %vm506_vm3, %v6031_v19 }
 0x45b   : > { %v2573_v4 = vsel %vm400_vm2, %v2548_v24, %v2550_v2  ;;  %4497 = vmatpush1.msk.msra.mxu0 %vm485_vm1, %v6042_v59  ;;  %2891 = vmatprep.mubr.f32.mxu0 %v6516_v43  ;;  %v2574_v29 = vsel %vm400_vm2, %v2550_v2, %v2552_v30 }
 0x45c   : > { %v6055_v7 = vsel %vm485_vm1, %v5891_v1, %v2573_v4  ;;  %v6085_v61 = vsel %vm485_vm1, %v5903_v17, %v2574_v29 }
 0x45d   : > { %2786 = vmatprep.subr.mxu1 %v6055_v7 }
 0x45e   : > { %v2560_v16 = vpop.permute.xlu0 %2559  ;;  %2787 = vmatpush1.msra.mxu1 %v6060_v39  ;;  %v2554_v33 = vpop.permute.xlu1 %2553 }
 0x45f   : > { %v2575_v1 = vsel %vm400_vm2, %v2552_v30, %v2554_v33  ;;  %4499 = vmatprep.subr.msk.mxu1 %vm485_vm1, %v6063_v56  ;;  %4495 = vmatmul.mubr.msk.f32.vlgmr.msra.gmra.mxu1 %vm506_vm3, %v6031_v19  ;;  %v2576_v31 = vsel %vm400_vm2, %v2554_v33, %v2556_v42 }
 0x460   : > { %4500 = vmatpush1.msk.msra.mxu1 %vm485_vm1, %v6068_v0  ;;  %v6079_v27 = vsel %vm485_vm1, %v5905_v50, %v2575_v1  ;;  %2962 = vmatprep.mubr.f32.mxu1 %v6516_v43  ;;  %v6093_v50 = vsel %vm468_vm0, %v2616_v10, %v2618_v44  ;;  %v6110_v15 = vsel %vm485_vm1, %v5917_v28, %v2576_v31 }
 0x461   : > { %2857 = vmatprep.subr.mxu0 %v6079_v27 }
 0x462   : > { %v2564_v3 = vpop.permute.xlu0 %2563  ;;  %2858 = vmatpush1.msra.mxu0 %v6085_v61  ;;  %v2558_v11 = vpop.permute.xlu1 %2557 }
 0x463   : > { %v2577_v38 = vsel %vm400_vm2, %v2556_v42, %v2558_v11  ;;  %4502 = vmatprep.subr.msk.mxu0 %vm485_vm1, %v6088_v21  ;;  %4498 = vmatmul.mubr.msk.f32.vlgmr.msra.gmra.mxu0 %vm506_vm3, %v6031_v19  ;;  %v2578_v54 = vsel %vm400_vm2, %v2558_v11, %v2560_v16 }
 0x464   : > { %4503 = vmatpush1.msk.msra.mxu0 %vm485_vm1, %v6093_v50  ;;  %v6104_v17 = vsel %vm485_vm1, %v5919_v57, %v2577_v38  ;;  %3033 = vmatprep.mubr.f32.mxu0 %v6516_v43  ;;  %v6119_v57 = vsel %vm468_vm0, %v2620_v45, %v2622_v49  ;;  %v6136_v45 = vsel %vm485_vm1, %v5931_v6, %v2578_v54 }
 0x465   : > { %2928 = vmatprep.subr.mxu1 %v6104_v17 }
 0x466   : > { %2929 = vmatpush1.msra.mxu1 %v6110_v15  ;;  %v2562_v10 = vpop.permute.xlu1 %2561  ;;  %v2598_v28 = vpop.permute.xlu0 %2597 }
 0x467   : > { %v2579_v44 = vsel %vm400_vm2, %v2560_v16, %v2562_v10  ;;  %4505 = vmatprep.subr.msk.mxu1 %vm485_vm1, %v6114_v62  ;;  %4501 = vmatmul.mubr.msk.f32.vlgmr.msra.gmra.mxu1 %vm506_vm3, %v6031_v19  ;;  %v2580_v49 = vsel %vm400_vm2, %v2562_v10, %v2564_v3  ;;  %v2627_v24 = vsel %vm468_vm0, %v2598_v28, %v5996_v36 }
 0x468   : > { %4506 = vmatpush1.msk.msra.mxu1 %vm485_vm1, %v6119_v57  ;;  %v6130_v23 = vsel %vm485_vm1, %v5933_v52, %v2579_v44  ;;  %3104 = vmatprep.mubr.f32.mxu1 %v6516_v43  ;;  %v6160_v36 = vsel %vm485_vm1, %v5943_v12, %v2580_v49 }
 0x469   : > { %2999 = vmatprep.subr.mxu0 %v6130_v23 }
 0x46a   : > { %3000 = vmatpush1.msra.mxu0 %v6136_v45  ;;  %v6140_v53 = vpop.permute.xlu1 %2565 }
 0x46b   : > { %v2581_v52 = vsel %vm400_vm2, %v2564_v3, %v6140_v53  ;;  %4508 = vmatprep.subr.msk.mxu0 %vm485_vm1, %v6003_v41  ;;  %4504 = vmatmul.mubr.msk.f32.vlgmr.msra.gmra.mxu0 %vm506_vm3, %v6031_v19 }
 0x46c   : > { %4509 = vmatpush1.msk.msra.mxu0 %vm485_vm1, %v2627_v24  ;;  %v6153_v6 = vsel %vm485_vm1, %v5945_v47, %v2581_v52  ;;  %3180 = vmatprep.mubr.f32.mxu0 %v6516_v43  ;;  %v2655_v47 = vld [vmem:[#allocation7] sm:$0xf] }
 0x46d   : > { %3070 = vmatprep.subr.mxu1 %v6153_v6  ;;  %3146 = vmatprep.subr.mxu0 %v6035_v37 }
 0x46e   : > { %3071 = vmatpush1.msra.mxu1 %v6160_v36  ;;  %v2540_v41 = vpop.permute.xlu1 %2539 }
 0x46f   : > { %v2569_v58 = vsel %vm400_vm2, %v2540_v41, %v6027_v48  ;;  %4507 = vmatmul.mubr.msk.f32.vlgmr.msra.gmra.mxu1 %vm506_vm3, %v6031_v19  ;;  %4511 = vmatprep.subr.msk.mxu1 %vm485_vm1, %v6013_v22 }
 0x470   : > { %4512 = vmatpush1.msk.msra.mxu1 %vm485_vm1, %v5999_v46  ;;  %v2641_v12 = vsel %vm485_vm1, %v5984_v60, %v2569_v58  ;;  %3251 = vmatprep.mubr.f32.mxu1 %v6516_v43  ;;  %v3543_v60 = vld [vmem:[#allocation7 + $0x8] sm:$0xf] }
 0x471   : > { %3147 = vmatpush1.msra.mxu0 %v2641_v12  ;;  %3217 = vmatprep.subr.mxu1 %v6060_v39 }
 0x472   : > { %4510 = vmatmul.mubr.msk.f32.vlgmr.msra.gmra.mxu0 %vm506_vm3, %v2655_v47  ;;  %3218 = vmatpush1.msra.mxu1 %v6024_v63 }
 0x473   : > { %4514 = vmatprep.subr.msk.mxu0 %vm485_vm1, %v6042_v59  ;;  %4513 = vmatmul.mubr.msk.f32.vlgmr.msra.gmra.mxu1 %vm506_vm3, %v2655_v47 }
 0x474   : > { %4515 = vmatpush1.msk.msra.mxu0 %vm485_vm1, %v6010_v8  ;;  %4517 = vmatprep.subr.msk.mxu1 %vm485_vm1, %v6068_v0 }
 0x475   : > { %3288 = vmatprep.subr.mxu0 %v6085_v61  ;;  %4518 = vmatpush1.msk.msra.mxu1 %vm485_vm1, %v6038_v5 }
 0x476   : > { %3289 = vmatpush1.msra.mxu0 %v6055_v7  ;;  %3322 = vmatprep.mubr.f32.mxu0 %v6516_v43 }
 0x477   : > { %3359 = vmatprep.subr.mxu1 %v6110_v15  ;;  %4516 = vmatmul.mubr.msk.f32.vlgmr.msra.gmra.mxu0 %vm506_vm3, %v2655_v47 }
 0x478   : > { %3360 = vmatpush1.msra.mxu1 %v6079_v27  ;;  %3393 = vmatprep.mubr.f32.mxu1 %v6516_v43 }
 0x479   : > { %4520 = vmatprep.subr.msk.mxu0 %vm485_vm1, %v6093_v50  ;;  %4519 = vmatmul.mubr.msk.f32.vlgmr.msra.gmra.mxu1 %vm506_vm3, %v2655_v47 }
 0x47a   : > { %4521 = vmatpush1.msk.msra.mxu0 %vm485_vm1, %v6063_v56  ;;  %4523 = vmatprep.subr.msk.mxu1 %vm485_vm1, %v6119_v57 }
 0x47b   : > { %3430 = vmatprep.subr.mxu0 %v6136_v45  ;;  %4524 = vmatpush1.msk.msra.mxu1 %vm485_vm1, %v6088_v21 }
 0x47c   : > { %3431 = vmatpush1.msra.mxu0 %v6104_v17  ;;  %3464 = vmatprep.mubr.f32.mxu0 %v6516_v43 }
 0x47d   : > { %3501 = vmatprep.subr.mxu1 %v6160_v36  ;;  %4522 = vmatmul.mubr.msk.f32.vlgmr.msra.gmra.mxu0 %vm506_vm3, %v2655_v47 }
 0x47e   : > { %3502 = vmatpush1.msra.mxu1 %v6130_v23  ;;  %3535 = vmatprep.mubr.f32.mxu1 %v6516_v43 }
 0x47f   : > { %4526 = vmatprep.subr.msk.mxu0 %vm485_vm1, %v6013_v22  ;;  %4525 = vmatmul.mubr.msk.f32.vlgmr.msra.gmra.mxu1 %vm506_vm3, %v2655_v47 }
 0x480   : > { %4527 = vmatpush1.msk.msra.mxu0 %vm485_vm1, %v5999_v46  ;;  %4529 = vmatprep.subr.msk.mxu1 %vm485_vm1, %v6042_v59  ;;  %v2626_v46 = vpop.permute.xlu0 %2625 }
 0x481   : > { %3579 = vmatprep.subr.mxu0 %v6060_v39  ;;  %4530 = vmatpush1.msk.msra.mxu1 %vm485_vm1, %v6010_v8  ;;  %v2568_v8 = vpop.permute.xlu1 %2567  ;;  %v2640_v22 = vsel %vm468_vm0, %v6019_v51, %v2626_v46 }
 0x482   : > { %3580 = vmatpush1.msra.mxu0 %v6024_v63  ;;  %3613 = vmatprep.mubr.f32.mxu0 %v6516_v43  ;;  %v2582_v63 = vsel %vm400_vm2, %v6140_v53, %v2568_v8  ;;  %v6517_v53 = vsub.s32 7, %v5634_v25 }
 0x483   : > { %3650 = vmatprep.subr.mxu1 %v6085_v61  ;;  %4528 = vmatmul.mubr.msk.f32.vlgmr.msra.gmra.mxu0 %vm506_vm3, %v3543_v60  ;;  %v2654_v51 = vsel %vm485_vm1, %v5952_v9, %v2582_v63 }
 0x484   : > { %3651 = vmatpush1.msra.mxu1 %v6055_v7  ;;  %3684 = vmatprep.mubr.f32.mxu1 %v6516_v43 }
 0x485   : > { %4532 = vmatprep.subr.msk.mxu0 %vm485_vm1, %v6068_v0  ;;  %4531 = vmatmul.mubr.msk.f32.vlgmr.msra.gmra.mxu1 %vm506_vm3, %v3543_v60 }
 0x486   : > { %4533 = vmatpush1.msk.msra.mxu0 %vm485_vm1, %v6038_v5  ;;  %4535 = vmatprep.subr.msk.mxu1 %vm485_vm1, %v6093_v50 }
 0x487   : > { %3721 = vmatprep.subr.mxu0 %v6110_v15  ;;  %4536 = vmatpush1.msk.msra.mxu1 %vm485_vm1, %v6063_v56  ;;  %v6275_v15 = vld [vmem:[#allocation10 + $0x8] sm:$0xf] }
 0x488   : > { %3722 = vmatpush1.msra.mxu0 %v6079_v27  ;;  %3755 = vmatprep.mubr.f32.mxu0 %v6516_v43  ;;  %v4026_v41 = vrot.slane %v6275_v15, %v5641_v26  ;;  %v4034_v12 = vrot.slane %v6275_v15, %v5653_v14 }
 0x489   : > { %3792 = vmatprep.subr.mxu1 %v6136_v45  ;;  %4534 = vmatmul.mubr.msk.f32.vlgmr.msra.gmra.mxu0 %vm506_vm3, %v3543_v60 }
 0x48a   : > { %3793 = vmatpush1.msra.mxu1 %v6104_v17  ;;  %3826 = vmatprep.mubr.f32.mxu1 %v6516_v43 }
 0x48b   : > { %4538 = vmatprep.subr.msk.mxu0 %vm485_vm1, %v6119_v57  ;;  %4537 = vmatmul.mubr.msk.f32.vlgmr.msra.gmra.mxu1 %vm506_vm3, %v3543_v60 }
 0x48c   : > { %4539 = vmatpush1.msk.msra.mxu0 %vm485_vm1, %v6088_v21  ;;  %4541 = vmatprep.subr.msk.mxu1 %vm485_vm1, %v2640_v22  ;;  %v3987_v21 = vld [vmem:[#allocation10] sm:$0xff] }
 0x48d   : > { %3863 = vmatprep.subr.mxu0 %v6160_v36  ;;  %4542 = vmatpush1.msk.msra.mxu1 %vm485_vm1, %v6114_v62  ;;  %v3994_v11 = vrot.slane %v3987_v21, %v5641_v26  ;;  %v4002_v38 = vrot.slane %v3987_v21, %v5653_v14  ;;  %v3998_v17 = vrot.slane %v3987_v21, %v5650_v13 }
 0x48e   : > { %3864 = vmatpush1.msra.mxu0 %v6130_v23  ;;  %3897 = vmatprep.mubr.f32.mxu0 %v6516_v43  ;;  %v4006_v57 = vrot.slane %v3987_v21, %v5659_v34  ;;  %v4010_v23 = vrot.slane %v3987_v21, %v5656_v32  ;;  %v4018_v45 = vrot.slane %v3987_v21, %v5665_v40 }
 0x48f   : > { %3934 = vmatprep.subr.mxu1 %v2654_v51  ;;  %4540 = vmatmul.mubr.msk.f32.vlgmr.msra.gmra.mxu0 %vm506_vm3, %v3543_v60  ;;  %v4014_v49 = vrot.slane %v3987_v21, %v5662_v35  ;;  %v4022_v24 = vrot.slane %v3987_v21, %v6517_v53  ;;  %v4030_v32 = vrot.slane %v6275_v15, %v5650_v13 }
 0x490   : > { %3935 = vmatpush1.msra.mxu1 %v6153_v6  ;;  %3968 = vmatprep.mubr.f32.mxu1 %v6516_v43  ;;  %v4038_v35 = vrot.slane %v6275_v15, %v5659_v34 }
 0x491   : > { %4543 = vmatmul.mubr.msk.f32.vlgmr.msra.gmra.mxu1 %vm506_vm3, %v3543_v60 }
 0x51a   : > { %v2751_v30 = vpop.f32.mrf.mxu0 }
 0x51c   : > { %v2753_v20 = vpop.f32.mrf.mxu0 }
 0x51f   : > { %v2822_v48 = vpop.f32.mrf.mxu1 }
 0x521   : > { %v2824_v19 = vpop.f32.mrf.mxu1 }
 0x523   : > { %v2893_v37 = vpop.f32.mrf.mxu0 }
 0x525   : > { %v2895_v59 = vpop.f32.mrf.mxu0 }
 0x527   : > { %v2964_v5 = vpop.f32.mrf.mxu1 }
 0x529   : > { %v2966_v55 = vpop.f32.mrf.mxu1 }
 0x52b   : > { %v3035_v42 = vpop.f32.mrf.mxu0 }
 0x52d   : > { %v6264_v9 = vpop.f32.mrf.mxu0 }
 0x52f   : > { %v6262_v2 = vpop.f32.mrf.mxu1 }
 0x531   : > { %v6266_v4 = vpop.f32.mrf.mxu1 }
 0x532   : > { %v3182_v7 = vpop.f32.mrf.mxu0 }
 0x533   : > { %v3253_v39 = vpop.f32.mrf.mxu1  ;;  %v3183_v3 = vadd.f32 %v3182_v7, %v2751_v30 }
 0x534   : > { %v3184_v43 = vpop.f32.mrf.mxu0  ;;  %v3254_v62 = vadd.f32 %v3253_v39, %v2822_v48 }
 0x535   : > { %v3255_v56 = vpop.f32.mrf.mxu1  ;;  %v3185_v54 = vadd.f32 %v3184_v43, %v2753_v20 }
 0x536   : > { %v3256_v58 = vadd.f32 %v3255_v56, %v2824_v19 }
 0x537   : > { %v3324_v29 = vpop.f32.mrf.mxu0 }
 0x538   : > { %v3325_v25 = vadd.f32 %v3324_v29, %v2893_v37 }
 0x539   : > { %v3395_v16 = vpop.f32.mrf.mxu1  ;;  %v3326_v33 = vpop.f32.mrf.mxu0 }
 0x53a   : > { %v3396_v8 = vadd.f32 %v3395_v16, %v2964_v5  ;;  %v3327_v22 = vadd.f32 %v3326_v33, %v2895_v59 }
 0x53b   : > { %v3397_v0 = vpop.f32.mrf.mxu1 }
 0x53c   : > { %v3398_v63 = vadd.f32 %v3397_v0, %v2966_v55 }
 0x53d   : > { %v3466_v1 = vpop.f32.mrf.mxu0 }
 0x53e   : > { %v3467_v48 = vadd.f32 %v3466_v1, %v3035_v42 }
 0x53f   : > { %v3537_v27 = vpop.f32.mrf.mxu1  ;;  %v6268_v61 = vpop.f32.mrf.mxu0 }
 0x541   : > { %v6270_v31 = vpop.f32.mrf.mxu1 }
 0x543   : > { %v3615_v50 = vpop.f32.mrf.mxu0 }
 0x544   : > { %v3975_v10 = vadd.f32 %v3615_v50, %v3183_v3 }
 0x545   : > { %v3686_v44 = vpop.f32.mrf.mxu1  ;;  %v3617_v28 = vpop.f32.mrf.mxu0 }
 0x546   : > { %v6283_v52 = vmul.f32 %v3994_v11, %v3975_v10  ;;  %v3977_v6 = vadd.f32 %v3686_v44, %v3254_v62  ;;  %v3976_v36 = vadd.f32 %v3617_v28, %v3185_v54  ;;  %v3538_v62 = vadd.f32 %v3537_v27, %v6262_v2 }
 0x547   : > { %v3688_v47 = vpop.f32.mrf.mxu1  ;;  %v3469_v28 = vadd.f32 %v6268_v61, %v6264_v9 }
 0x548   : > { %v4088_v40 = vmul.f32 %v6283_v52, %v6283_v52  ;;  %v6295_v60 = vmul.f32 %v4002_v38, %v3977_v6  ;;  %v6297_v46 = vmul.f32 %v3998_v17, %v3976_v36  ;;  %v3978_v51 = vadd.f32 %v3688_v47, %v3256_v58 }
 0x549   : > { %v3757_v30 = vpop.f32.mrf.mxu0  ;;  %v4063_v20 = vsel %vm485_vm1, %v6283_v52, 0.0 }
 0x54a   : > { %v4090_v19 = vmul.f32 %v6295_v60, %v6295_v60  ;;  %v4064_v37 = vsel %vm485_vm1, %v6297_v46, 0.0  ;;  %v4089_v39 = vmul.f32 %v6297_v46, %v6297_v46  ;;  %v6307_v43 = vmul.f32 %v4006_v57, %v3978_v51 }
 0x54b   : > { %v4065_v7 = vadd.f32 %v4064_v37, %v4063_v20  ;;  %v3979_v5 = vadd.f32 %v3757_v30, %v3325_v25  ;;  %v3828_v59 = vpop.f32.mrf.mxu1  ;;  %v3759_v55 = vpop.f32.mrf.mxu0  ;;  %v4100_v42 = vsel %vm485_vm1, %v4088_v40, 0.0  ;;  %v4066_v56 = vsel %vm485_vm1, %v6295_v60, 0.0 }
 0x54c   : > { %v3981_v29 = vadd.f32 %v3828_v59, %v3396_v8  ;;  %v3980_v16 = vadd.f32 %v3759_v55, %v3327_v22  ;;  %v4101_v33 = vsel %vm485_vm1, %v4089_v39, 0.0  ;;  %v4068_v1 = vsel %vm485_vm1, %v6307_v43, 0.0 }
 0x54d   : > { %v4067_v0 = vadd.f32 %v4066_v56, %v4065_v7  ;;  %v4091_v21 = vmul.f32 %v6307_v43, %v6307_v43  ;;  %v3830_v3 = vpop.f32.mrf.mxu1  ;;  %v4102_v11 = vadd.f32 %v4101_v33, %v4100_v42  ;;  %v6317_v50 = vmul.f32 %v4010_v23, %v3979_v5 }
 0x54e   : > { %v6319_v38 = vmul.f32 %v4018_v45, %v3981_v29  ;;  %v6321_v17 = vmul.f32 %v4014_v49, %v3980_v16  ;;  %v4103_v54 = vsel %vm485_vm1, %v4090_v19, 0.0  ;;  %v3982_v57 = vadd.f32 %v3830_v3, %v3398_v63 }
 0x54f   : > { %v4069_v10 = vadd.f32 %v4068_v1, %v4067_v0  ;;  %v3899_v44 = vpop.f32.mrf.mxu0  ;;  %v4104_v53 = vadd.f32 %v4103_v54, %v4102_v11  ;;  %v4070_v6 = vsel %vm485_vm1, %v6317_v50, 0.0  ;;  %v4092_v23 = vmul.f32 %v6317_v50, %v6317_v50 }
 0x550   : > { %v4105_v45 = vsel %vm485_vm1, %v4091_v21, 0.0  ;;  %v4094_v2 = vmul.f32 %v6319_v38, %v6319_v38  ;;  %v4093_v27 = vmul.f32 %v6321_v17, %v6321_v17  ;;  %v4072_v9 = vsel %vm485_vm1, %v6321_v17, 0.0 }
 0x551   : > { %v4071_v49 = vadd.f32 %v4070_v6, %v4069_v10  ;;  %v3970_v36 = vpop.f32.mrf.mxu1  ;;  %v4106_v58 = vadd.f32 %v4105_v45, %v4104_v53  ;;  %v6338_v61 = vmul.f32 %v4022_v24, %v3982_v57  ;;  %v3983_v47 = vadd.f32 %v3899_v44, %v3467_v48  ;;  %v3901_v25 = vpop.f32.mrf.mxu0 }
 0x552   : > { %v3540_v40 = vadd.f32 %v6270_v31, %v6266_v4  ;;  %v4107_v8 = vsel %vm485_vm1, %v4092_v23, 0.0  ;;  %v3985_v63 = vadd.f32 %v3970_v36, %v3538_v62  ;;  %v4074_v20 = vsel %vm485_vm1, %v6319_v38, 0.0 }
 0x553   : > { %v4073_v22 = vadd.f32 %v4072_v9, %v4071_v49  ;;  %v3972_v51 = vpop.f32.mrf.mxu1  ;;  %v4108_v30 = vadd.f32 %v4107_v8, %v4106_v58  ;;  %v4109_v19 = vsel %vm485_vm1, %v4093_v27, 0.0  ;;  %v6349_v24 = vmul.f32 %v4026_v41, %v3983_v47  ;;  %v4139_v8 = vld [vmem:[%s5112_s25 + $0x8] sm:$0xff] }
 0x554   : > { %v4095_v4 = vmul.f32 %v6338_v61, %v6338_v61  ;;  %v3984_v31 = vadd.f32 %v3901_v25, %v3469_v28  ;;  %v3986_v37 = vadd.f32 %v3972_v51, %v3540_v40  ;;  %v4111_v7 = vsel %vm485_vm1, %v4094_v2, 0.0 }
 0x555   : > { %v4075_v48 = vadd.f32 %v4074_v20, %v4073_v22  ;;  %v4110_v39 = vadd.f32 %v4109_v19, %v4108_v30  ;;  %v4076_v5 = vsel %vm485_vm1, %v6338_v61, 0.0  ;;  %v4096_v55 = vmul.f32 %v6349_v24, %v6349_v24  ;;  %v4141_v30 = vld [vmem:[%s5112_s25 + $0x18] sm:$0xff]  ;;  %v4142_v19 = vld [vmem:[%s5112_s25 + $0x20] sm:$0xff] }
 0x556   : > { %v6361_v26 = vmul.f32 %v4034_v12, %v3985_v63  ;;  %v6366_v41 = vmul.f32 %v4030_v32, %v3984_v31  ;;  %v4078_v42 = vsel %vm485_vm1, %v6349_v24, 0.0  ;;  %v4113_v29 = vsel %vm485_vm1, %v4095_v4, 0.0  ;;  %v4140_v63 = vld [vmem:[%s5112_s25 + $0x10] sm:$0xff]  ;;  %v4143_v4 = vld [vmem:[%s5112_s25 + $0x28] sm:$0xff] }
 0x557   : > { %v4077_v59 = vadd.f32 %v4076_v5, %v4075_v48  ;;  %v4112_v56 = vadd.f32 %v4111_v7, %v4110_v39  ;;  %v6376_v14 = vmul.f32 %v4038_v35, %v3986_v37  ;;  %v4115_v1 = vsel %vm485_vm1, %v4096_v55, 0.0  ;;  %v4144_v37 = vld [vmem:[%s5112_s25 + $0x30] sm:$0xff] }
 0x558   : > { %v4097_v16 = vmul.f32 %v6366_v41, %v6366_v41  ;;  %v4080_v13 = vsel %vm485_vm1, %v6366_v41, 0.0  ;;  %v4098_v0 = vmul.f32 %v6361_v26, %v6361_v26  ;;  %v4082_v21 = vsel %vm485_vm1, %v6361_v26, 0.0 }
 0x559   : > { %v4079_v12 = vadd.f32 %v4078_v42, %v4077_v59  ;;  %v4114_v32 = vadd.f32 %v4113_v29, %v4112_v56  ;;  %v4099_v34 = vmul.f32 %v6376_v14, %v6376_v14  ;;  %v4084_v35 = vsel %vm485_vm1, %v6376_v14, 0.0  ;;  %v4145_v59 = vld [vmem:[%s5112_s25 + $0x38] sm:$0xf]  ;;  %s4847_s25 = sshll.u32 %s4933_s12, 4  ;;  %s4848_s25 = int_to_ptr.vmem [resolvable:$false] %s4847_s25 }
 0x55a   : > { %v4117_v15 = vsel %vm485_vm1, %v4097_v16, 0.0  ;;  %v4119_v10 = vsel %vm485_vm1, %v4098_v0, 0.0  ;;  %v4931_v53 = vmov 2   ;;  %v4932_v9 = vmov 3   ;;  %s4849_s1 = scalar_lea.vmem %s4848_s25, 1536  ;;  %p4850_p0 = scmp.lt.s32.totalorder %s6446_s19, %s4848_s25 }
 0x55b   : > { %v4081_v33 = vadd.f32 %v4080_v13, %v4079_v12  ;;  %v4116_v3 = vadd.f32 %v4115_v1, %v4114_v32  ;;  %v4121_v44 = vsel %vm485_vm1, %v4099_v34, 0.0  ;;  %4682 = vset.pattern.permute.xlu1 %v4931_v53  ;;  %4683 = vset.pattern.permute.xlu0 %v4932_v9  ;;  %v4187_v22 = vcombine.high %v4139_v8, %v4139_v8  ;;  %p4851_p2 = scmp.lt.s32.totalorder %s4849_s1, %s4843_s11 }
 0x55c   : > { %v4188_v51 = vcombine.high %v4140_v63, %v4140_v63  ;;  %v4189_v20 = vcombine.high %v4141_v30, %v4141_v30  ;;  %v4190_v48 = vcombine.high %v4142_v19, %v4142_v19  ;;  %v4191_v31 = vcombine.high %v4143_v4, %v4143_v4 }
 0x55d   : > { %v4083_v11 = vadd.f32 %v4082_v21, %v4081_v33  ;;  %v4118_v62 = vadd.f32 %v4117_v15, %v4116_v3  ;;  %v4192_v7 = vcombine.high %v4144_v37, %v4144_v37  ;;  %p4852_p9 = por %p4851_p2, %p4850_p0 }
 0x55f   : > { %v4085_v54 = vadd.f32 %v4084_v35, %v4083_v11  ;;  %v4120_v57 = vadd.f32 %v4119_v10, %v4118_v62  ;;  %p4853_p10 = pnand %p4852_p9, %p4846_p6 }
 0x561   : > { %4086 = vadd.xlane.f32.xlu0 %v4085_v54  ;;  %v4122_v28 = vadd.f32 %v4121_v44, %v4120_v57 }
 0x563   : > { %4123 = vadd.xlane.f32.xlu1 %v4122_v28 }
 0x5ea   : > { %v4087_v6 = vpop.xlane.xlu0 %4086 }
 0x5eb   : > { %v4125_v23 = vmul.f32 0.0069444445, %v4087_v6 }
 0x5ec   : > { %v4124_v49 = vpop.xlane.xlu1 %4123 }
 0x5ed   : > { %v4127_v45 = vmul.f32 %v4125_v23, %v4125_v23  ;;  %v4126_v2 = vmul.f32 0.0069444445, %v4124_v49 }
 0x5ef   : > { %v4128_v27 = vsub.f32 %v4126_v2, %v4127_v45 }
 0x5f1   : > { %v4129_v36 = vmax.f32 %v4128_v27, 0.0 }
 0x5f3   : > { %v4130_v58 = vadd.f32 1e-05, %v4129_v36 }
 0x5f5   : > { %4709 = vrsqrt.f32 %v4130_v58 }
 0x602   : > { %v4710_v47 = vpop.eup %4709 }
 0x603   : > { %v4132_v25 = vmul.f32 %v4710_v47, %v5856_v18 }
 0x605   : > { %4148 = vperm.xlu1 %4682, %v4132_v25   ;;  %v4133_v40 = vmul.f32 %v4132_v25, %v4125_v23 }
 0x607   : > { %4135 = vrot.lane.b32.xlu0 %v4133_v40, %s4930_s29 }
 0x609   : > { %4193 = vrot.lane.b32.xlu1 %v4139_v8, %s4925_s28 }
 0x60b   : > { %4197 = vrot.lane.b32.xlu0 %v4140_v63, %s4925_s28 }
 0x60d   : > { %4195 = vrot.lane.b32.xlu1 %v4187_v22, %s4925_s28 }
 0x60f   : > { %4201 = vrot.lane.b32.xlu0 %v4141_v30, %s4925_s28 }
 0x611   : > { %4199 = vrot.lane.b32.xlu1 %v4188_v51, %s4925_s28 }
 0x613   : > { %4205 = vrot.lane.b32.xlu0 %v4142_v19, %s4925_s28 }
 0x615   : > { %4203 = vrot.lane.b32.xlu1 %v4189_v20, %s4925_s28 }
 0x617   : > { %4209 = vrot.lane.b32.xlu0 %v4143_v4, %s4925_s28 }
 0x619   : > { %4207 = vrot.lane.b32.xlu1 %v4190_v48, %s4925_s28 }
 0x61b   : > { %4213 = vrot.lane.b32.xlu0 %v4144_v37, %s4925_s28 }
 0x61d   : > { %4211 = vrot.lane.b32.xlu1 %v4191_v31, %s4925_s28 }
 0x621   : > { %4215 = vrot.lane.b32.xlu1 %v4192_v7, %s4925_s28 }
 0x679   : > { %v4136_v39 = vpop.permute.xlu0 %4135 }
 0x67a   : > { %v4138_v5 = vsub.f32 %v5856_v18, %v4136_v39 }
 0x67c   : > { %4165 = vperm.xlu0 %4683, %v4138_v5  }
 0x67d   : > { %v4198_v29 = vpop.permute.xlu0 %4197 }
 0x680   : > { %4217 = vrot.lane.b32.xlu0 %v4145_v59, %s4925_s28  ;;  %v4149_v55 = vpop.permute.xlu1 %4148 }
 0x681   : > { %v4202_v12 = vpop.permute.xlu0 %4201  ;;  %v4161_v21 = vmul.f32 %v4149_v55, %v6361_v26  ;;  %v4162_v3 = vmul.f32 %v4149_v55, %v6376_v14  ;;  %v4151_v18 = vmul.f32 %v4149_v55, %v6283_v52  ;;  %v4152_v34 = vmul.f32 %v4149_v55, %v6297_v46 }
 0x682   : > { %v4153_v15 = vmul.f32 %v4149_v55, %v6295_v60  ;;  %v4154_v35 = vmul.f32 %v4149_v55, %v6307_v43  ;;  %v4155_v62 = vmul.f32 %v4149_v55, %v6317_v50  ;;  %v4156_v10 = vmul.f32 %v4149_v55, %v6321_v17 }
 0x683   : > { %v4157_v57 = vmul.f32 %v4149_v55, %v6319_v38  ;;  %v4158_v26 = vmul.f32 %v4149_v55, %v6338_v61  ;;  %v4159_v14 = vmul.f32 %v4149_v55, %v6349_v24  ;;  %v4160_v43 = vmul.f32 %v4149_v55, %v6366_v41 }
 0x684   : > { %v4194_v42 = vpop.permute.xlu1 %4193 }
 0x685   : > { %v4206_v32 = vpop.permute.xlu0 %4205 }
 0x688   : > { %v4196_v56 = vpop.permute.xlu1 %4195 }
 0x689   : > { %v4210_v0 = vpop.permute.xlu0 %4209  ;;  %v4219_v52 = vsel %vm468_vm0, %v4194_v42, %v4196_v56  ;;  %v4220_v46 = vsel %vm468_vm0, %v4196_v56, %v4198_v29 }
 0x68c   : > { %v4200_v16 = vpop.permute.xlu1 %4199 }
 0x68d   : > { %v4214_v11 = vpop.permute.xlu0 %4213  ;;  %v4221_v60 = vsel %vm468_vm0, %v4198_v29, %v4200_v16  ;;  %v4222_v50 = vsel %vm468_vm0, %v4200_v16, %v4202_v12 }
 0x690   : > { %v4204_v13 = vpop.permute.xlu1 %4203 }
 0x691   : > { %v4223_v44 = vsel %vm468_vm0, %v4202_v12, %v4204_v13  ;;  %v4224_v17 = vsel %vm468_vm0, %v4204_v13, %v4206_v32 }
 0x694   : > { %v4208_v33 = vpop.permute.xlu1 %4207 }
 0x695   : > { %v4225_v38 = vsel %vm468_vm0, %v4206_v32, %v4208_v33  ;;  %v4226_v61 = vsel %vm468_vm0, %v4208_v33, %v4210_v0 }
 0x698   : > { %v4212_v1 = vpop.permute.xlu1 %4211 }
 0x699   : > { %v4227_v24 = vsel %vm468_vm0, %v4210_v0, %v4212_v1  ;;  %v4228_v28 = vsel %vm468_vm0, %v4212_v1, %v4214_v11 }
 0x69c   : > { %v4216_v54 = vpop.permute.xlu1 %4215 }
 0x69d   : > { %v4229_v53 = vsel %vm468_vm0, %v4214_v11, %v4216_v54 }
 0x6f7   : > { %v4166_v6 = vpop.permute.xlu0 %4165 }
 0x6f8   : > { %v4178_v23 = vadd.f32 %v4166_v6, %v4161_v21  ;;  %v4179_v41 = vadd.f32 %v4166_v6, %v4162_v3  ;;  %v4168_v45 = vadd.f32 %v4166_v6, %v4151_v18  ;;  %v4169_v49 = vadd.f32 %v4166_v6, %v4152_v34 }
 0x6f9   : > { %v4170_v2 = vadd.f32 %v4166_v6, %v4153_v15  ;;  %v4171_v27 = vadd.f32 %v4166_v6, %v4154_v35  ;;  %v4172_v36 = vadd.f32 %v4166_v6, %v4155_v62  ;;  %v4173_v58 = vadd.f32 %v4166_v6, %v4156_v10 }
 0x6fa   : > { %v4253_v9 = vadd.f32 %v4229_v53, %v4178_v23  ;;  %v4174_v47 = vadd.f32 %v4166_v6, %v4157_v57  ;;  %v4175_v25 = vadd.f32 %v4166_v6, %v4158_v26  ;;  %v4176_v40 = vadd.f32 %v4166_v6, %v4159_v14 }
 0x6fb   : > { %v4218_v8 = vpop.permute.xlu0 %4217  ;;  %v4177_v22 = vadd.f32 %v4166_v6, %v4160_v43  ;;  %v4243_v63 = vadd.f32 %v4219_v52, %v4168_v45  ;;  %v4244_v51 = vadd.f32 %v4220_v46, %v4169_v49  ;;  %v4245_v30 = vadd.f32 %v4221_v60, %v4170_v2 }
 0x6fc   : > { %v4230_v20 = vsel %vm468_vm0, %v4216_v54, %v4218_v8  ;;  %v4246_v19 = vadd.f32 %v4222_v50, %v4171_v27  ;;  %v4247_v48 = vadd.f32 %v4223_v44, %v4172_v36  ;;  %v4248_v4 = vadd.f32 %v4224_v17, %v4173_v58 }
 0x6fd   : > { %v4254_v31 = vadd.f32 %v4230_v20, %v4179_v41  ;;  %v4249_v37 = vadd.f32 %v4225_v38, %v4174_v47  ;;  %v4250_v7 = vadd.f32 %v4226_v61, %v4175_v25  ;;  %v4251_v39 = vadd.f32 %v4227_v24, %v4176_v40 }
 0x6fe   : > { %v4252_v5 = vadd.f32 %v4228_v28, %v4177_v22  ;;  %v4267_v59 = vcombine.low %v4243_v63, %v4244_v51  ;;  %v4268_v55 = vcombine.low %v4245_v30, %v4246_v19  ;;  %v4269_v42 = vcombine.low %v4247_v48, %v4248_v4 }
 0x6ff   : > { %v4272_v56 = vcombine.low %v4253_v9, %v4254_v31  ;;  %v4270_v29 = vcombine.low %v4249_v37, %v4250_v7 }
 0x700   : > { %v4271_v16 = vcombine.low %v4251_v39, %v4252_v5  ;;  %4279 = vst [vmem:[%s321_s26] sm:$0xff] %v4267_v59  ;;  %4280 = vst [vmem:[%s321_s26 + $0x8] sm:$0xff] %v4268_v55 }
 0x701   : > { %4281 = vst [vmem:[%s321_s26 + $0x10] sm:$0xff] %v4269_v42  ;;  %4284 = vst [vmem:[%s321_s26 + $0x28] sm:$0xff] %v4272_v56 }
 0x702   : > { %4282 = vst [vmem:[%s321_s26 + $0x18] sm:$0xff] %v4270_v29  ;;  %4283 = vst [vmem:[%s321_s26 + $0x20] sm:$0xff] %v4271_v16 }
 0x703   : > { %4856 = shalt.err (!%p4853_p10)
}
 0x704   : > { %s4857_s28 = scalar_lea.hbm %s6444_s15, 768  ;;  %s4861_s20 = scalar_lea.hbm %s6493_s6, 1536 }
 0x705   : > { %p4858_p12 = scmp.ne.s32.totalorder %s6444_s15, %s4857_s28  ;;  %p4862_p4 = scmp.lt.s32.totalorder %s6444_s15, %s6493_s6 }
 0x706   : > { %p4863_p13 = scmp.lt.s32.totalorder %s4861_s20, %s4857_s28 }
 0x707   : > { %p4859_p1 = pnand %p4858_p12, %p6518_p7 }
 0x708   : > { %p4864_p5 = por %p4863_p13, %p4862_p4 }
 0x709   : > { %p4860_p3 = pneg %p4859_p1 }
 0x70b   : > { %p4865_p8 = pnand %p4864_p5, %p4860_p3 }
 0x70d   : > { %4868 = shalt.err (!%p4865_p8)
}
 0x70e   : > { %4600 = dma.vmem_to_hbm [thread:$0]  (%p6518_p7), %s6446_s19, 768, %s6444_s15, %s4286_s30  }
 0x70f PF: > { %s4312_s10 = sand.u32 1, %s4903_s21   ;;  %p6519_p11 = scmp.ne.s32.totalorder %s6507_s17, 0 }
 0x710   : > { %p6520_p6 = scmp.ge.s32.totalorder %s4915_s24, 2  ;;  %s4313_s26 = scalar_lea.sflag [#allocation4], %s4312_s10 }
 0x712   : > { %p4620_p0 = pnand %p6520_p6, %p6519_p11 }
 0x714   : > { %p4621_p2 = pneg %p4620_p0 }
 0x716   : > { %4898 = dma.done.wait (%p4621_p2), %s4313_s26, 768  }
 0x717   : > { %4900 = vsyncadd (%p4621_p2), %s4313_s26, 4294966528  ;;  %p21_p9 = scmp.ge.s32.totalorder %s5051_s7, 4   ;;  %s6521_s21 = smov %s4907_s22 }
 0x718   : > { %s6522_s22 = smov %s4911_s23  ;;  %s6523_s23 = smov %s5062_s13 }
 0x719   : > { %s6524_s24 = smov %s5051_s7  ;;  %23 = sbr.rel (!%p21_p9) target bundleno = 9 (0x9), region = 109 }
 0x71e   :  { %4318 = vsyncpa [#allocation3], 1 }
 0x71f   :  { %4320 = vsyncpa [#allocation3 + $0x1], 1 }
 0x720   :  { %4321 = vsyncpa [#allocation6], 1 }
 0x721   :  { %4322 = vsyncpa [#allocation9], 1 }
 0x722   :  { %4323 = vsyncpa [#allocation4], 1 }
 0x723   :  { %4325 = vsyncpa [#allocation4 + $0x1], 1 }

</bundles_post_ra>
